<compile_context>
chip_gen: v6e
topology: v6e:2x2x1
jax: 0.10.0
libtpu: 0.0.40
codegen_flags: <defaults>
</compile_context>

<pallas_src>
import math
import functools

import jax
import jax.numpy as jnp
from jax.experimental import pallas as pl
from jax.experimental.pallas import tpu as pltpu

LN_EPS = 1e-12          # DistilBERT LayerNorm eps (python float -> literal)


# ---------------------------------------------------------------- kernel math
def _layer_norm(x, gamma, beta):
    mu = jnp.mean(x, axis=-1, keepdims=True)
    var = jnp.mean(jnp.square(x - mu), axis=-1, keepdims=True)
    return (x - mu) * jax.lax.rsqrt(var + LN_EPS) * gamma + beta


def _softmax(x):
    m = jnp.max(x, axis=-1, keepdims=True)
    e = jnp.exp(x - m)
    return e * pl.reciprocal(jnp.sum(e, axis=-1, keepdims=True), approx=True)


# ----------------------------------------------------------- fused encoder kernel
def encoder_kernel(n_heads,
                   x_ref, mask_ref, pos_ref, eg_ref, eb_ref,
                   wq_ref, bq_ref, wk_ref, bk_ref, wv_ref, bv_ref,
                   wo_ref, bo_ref, g1_ref, be1_ref,
                   w1_ref, bf1_ref, w2_ref, bf2_ref, g2_ref, be2_ref,
                   o_ref, h_ref):
    l = pl.program_id(1)

    # ---- layer 0: fused (word_emb + pos_emb) add + embedding LayerNorm ----
    @pl.when(l == 0)
    def _():
        emb = x_ref[0] + pos_ref[...]
        h_ref[...] = _layer_norm(emb, eg_ref[...], eb_ref[...])

    h = h_ref[...]                                    # (S, D) f32 residual stream
    S, D = h.shape
    hd = D // n_heads
    scale = 1.0 / math.sqrt(hd)

    # --- self attention (bf16 matmuls, f32 accumulation) ---
    hb = h.astype(jnp.bfloat16)
    q = jnp.dot(hb, wq_ref[0], preferred_element_type=jnp.float32) + bq_ref[0]
    k = jnp.dot(hb, wk_ref[0], preferred_element_type=jnp.float32) + bk_ref[0]
    v = jnp.dot(hb, wv_ref[0], preferred_element_type=jnp.float32) + bv_ref[0]

    # heads-major layout: (H, S, hd) — batched einsums, no per-head loop/concat
    qh = jnp.transpose(q.reshape(S, n_heads, hd), (1, 0, 2)).astype(jnp.bfloat16)
    kh = jnp.transpose(k.reshape(S, n_heads, hd), (1, 0, 2)).astype(jnp.bfloat16)
    vh = jnp.transpose(v.reshape(S, n_heads, hd), (1, 0, 2)).astype(jnp.bfloat16)

    s = jnp.einsum('hqd,hkd->hqk', qh, kh,
                   preferred_element_type=jnp.float32) * scale      # (H, S, S)
    s = s + mask_ref[0]                                # additive key-padding mask
    p = _softmax(s)                                    # f32 softmax
    ctx = jnp.einsum('hqk,hkd->hqd', p.astype(jnp.bfloat16), vh,
                     preferred_element_type=jnp.float32)             # (H, S, hd)
    ctx = jnp.transpose(ctx, (1, 0, 2)).reshape(S, D)

    attn = jnp.dot(ctx.astype(jnp.bfloat16), wo_ref[0],
                   preferred_element_type=jnp.float32) + bo_ref[0]
    sa = _layer_norm(attn + h, g1_ref[0], be1_ref[0])  # post-LN (DistilBERT)

    # --- feed-forward ---
    # TODO(synk): DistilBERT uses exact erf-GELU; tanh-approx GELU used here
    # (lax.erf lowering in Mosaic is not guaranteed; ~1e-3 relative difference).
    h1 = jnp.dot(sa.astype(jnp.bfloat16), w1_ref[0],
                 preferred_element_type=jnp.float32) + bf1_ref[0]
    h1 = jax.nn.gelu(h1, approximate=True)
    h2 = jnp.dot(h1.astype(jnp.bfloat16), w2_ref[0],
                 preferred_element_type=jnp.float32) + bf2_ref[0]
    out = _layer_norm(h2 + sa, g2_ref[0], be2_ref[0])

    h_ref[...] = out

    # ---- last layer: emit only the CLS (target_token_idx = 0) row ----
    @pl.when(l == pl.num_programs(1) - 1)
    def _():
        o_ref[0] = out[0:1, :]


# -------------------------------------------------------------- params / forward
def init_params(key, vocab, max_pos, dim, ffn, n_layers):
    ks = jax.random.split(key, 14)

    def nrm(k, shape, dtype=jnp.float32):
        return (jax.random.normal(k, shape, jnp.float32) * 0.02).astype(dtype)

    return {
        "word_emb": nrm(ks[0], (vocab, dim)),
        "pos_emb": nrm(ks[1], (max_pos, dim)),
        "emb_ln_g": jnp.ones((1, dim), jnp.float32),
        "emb_ln_b": jnp.zeros((1, dim), jnp.float32),
        # stacked per-layer weights: leading L dim is a grid axis in the kernel.
        "WQ": nrm(ks[2], (n_layers, dim, dim), jnp.bfloat16),
        "BQ": nrm(ks[3], (n_layers, 1, dim)),
        "WK": nrm(ks[4], (n_layers, dim, dim), jnp.bfloat16),
        "BK": nrm(ks[5], (n_layers, 1, dim)),
        "WV": nrm(ks[6], (n_layers, dim, dim), jnp.bfloat16),
        "BV": nrm(ks[7], (n_layers, 1, dim)),
        "WO": nrm(ks[8], (n_layers, dim, dim), jnp.bfloat16),
        "BO": nrm(ks[9], (n_layers, 1, dim)),
        "G1": jnp.ones((n_layers, 1, dim), jnp.float32),
        "BE1": jnp.zeros((n_layers, 1, dim), jnp.float32),
        "W1": nrm(ks[10], (n_layers, dim, ffn), jnp.bfloat16),
        "BF1": nrm(ks[11], (n_layers, 1, ffn)),
        "W2": nrm(ks[12], (n_layers, ffn, dim), jnp.bfloat16),
        "BF2": nrm(ks[13], (n_layers, 1, dim)),
        "G2": jnp.ones((n_layers, 1, dim), jnp.float32),
        "BE2": jnp.zeros((n_layers, 1, dim), jnp.float32),
    }


def text_encoder_forward(params, input_ids, attention_mask, n_heads):
    # TODO(synk): DistilBertTokenizer (strings -> ids) has no tensor equivalent;
    # the kernel consumes input_ids / attention_mask as the tokenizer would emit.
    B, S = input_ids.shape
    L, D, FF = params["W1"].shape

    x = jnp.take(params["word_emb"], input_ids, axis=0).astype(jnp.float32)  # (B,S,D)
    pos = params["pos_emb"][:S].astype(jnp.float32)                          # (S,D)
    # additive key-side padding mask: 0 where attended, -1e9 where padded
    mask_add = ((1.0 - attention_mask.astype(jnp.float32)) * -1e9).reshape(B, 1, S)

    per_batch = lambda shape: pl.BlockSpec((1,) + shape, lambda b, l: (b, 0, 0))
    per_layer = lambda shape: pl.BlockSpec((1,) + shape, lambda b, l: (l, 0, 0))
    shared = lambda shape: pl.BlockSpec(shape, lambda b, l: (0,) * len(shape))

    kernel = functools.partial(encoder_kernel, n_heads)
    out = pl.pallas_call(
        kernel,
        out_shape=jax.ShapeDtypeStruct((B, 1, D), jnp.float32),
        grid=(B, L),
        in_specs=[
            per_batch((S, D)),                        # gathered word embeddings
            per_batch((1, S)),                        # additive key mask
            shared((S, D)),                           # positional embeddings
            shared((1, D)), shared((1, D)),           # embedding LayerNorm g/b
            per_layer((D, D)), per_layer((1, D)),     # Wq, bq
            per_layer((D, D)), per_layer((1, D)),     # Wk, bk
            per_layer((D, D)), per_layer((1, D)),     # Wv, bv
            per_layer((D, D)), per_layer((1, D)),     # Wo, bo
            per_layer((1, D)), per_layer((1, D)),     # attn LayerNorm g/b
            per_layer((D, FF)), per_layer((1, FF)),   # FFN lin1
            per_layer((FF, D)), per_layer((1, D)),    # FFN lin2
            per_layer((1, D)), per_layer((1, D)),     # output LayerNorm g/b
        ],
        out_specs=per_batch((1, D)),
        scratch_shapes=[pltpu.VMEM((S, D), jnp.float32)],  # residual stream (f32)
        compiler_params=pltpu.CompilerParams(
            dimension_semantics=("parallel", "arbitrary")),
    )(x, mask_add, pos, params["emb_ln_g"], params["emb_ln_b"],
      params["WQ"], params["BQ"], params["WK"], params["BK"],
      params["WV"], params["BV"], params["WO"], params["BO"],
      params["G1"], params["BE1"], params["W1"], params["BF1"],
      params["W2"], params["BF2"], params["G2"], params["BE2"])

    return out[:, 0, :]          # (B, D) — last_hidden_state[:, 0, :]


if __name__ == "__main__":
    B, S = 2, 8
    VOCAB, MAX_POS, DIM, HEADS, FFN, LAYERS = 100, 32, 32, 4, 64, 2

    key = jax.random.PRNGKey(0)
    pkey, ikey = jax.random.split(key)
    params = init_params(pkey, VOCAB, MAX_POS, DIM, FFN, LAYERS)

    input_ids = jax.random.randint(ikey, (B, S), 0, VOCAB, dtype=jnp.int32)
    # second example has 2 padding tokens at the end
    attention_mask = jnp.array([[1] * S, [1] * (S - 2) + [0] * 2], dtype=jnp.int32)

    out = text_encoder_forward(params, input_ids, attention_mask, HEADS)
    out = jax.block_until_ready(out)
    assert out.shape == (B, DIM) and out.dtype == jnp.float32
    print("KERNEL_OK")
</pallas_src>

<mosaic_0001>
module attributes {stable_mosaic.version = 11 : i64} {
  func.func @encoder_kernel(%arg0: i32, %arg1: i32, %arg2: memref<1x8x32xf32, #tpu.memory_space<vmem>>, %arg3: memref<1x1x8xf32, #tpu.memory_space<vmem>>, %arg4: memref<8x32xf32, #tpu.memory_space<vmem>>, %arg5: memref<1x32xf32, #tpu.memory_space<vmem>>, %arg6: memref<1x32xf32, #tpu.memory_space<vmem>>, %arg7: memref<1x32x32xbf16, #tpu.memory_space<vmem>>, %arg8: memref<1x1x32xf32, #tpu.memory_space<vmem>>, %arg9: memref<1x32x32xbf16, #tpu.memory_space<vmem>>, %arg10: memref<1x1x32xf32, #tpu.memory_space<vmem>>, %arg11: memref<1x32x32xbf16, #tpu.memory_space<vmem>>, %arg12: memref<1x1x32xf32, #tpu.memory_space<vmem>>, %arg13: memref<1x32x32xbf16, #tpu.memory_space<vmem>>, %arg14: memref<1x1x32xf32, #tpu.memory_space<vmem>>, %arg15: memref<1x1x32xf32, #tpu.memory_space<vmem>>, %arg16: memref<1x1x32xf32, #tpu.memory_space<vmem>>, %arg17: memref<1x32x64xbf16, #tpu.memory_space<vmem>>, %arg18: memref<1x1x64xf32, #tpu.memory_space<vmem>>, %arg19: memref<1x64x32xbf16, #tpu.memory_space<vmem>>, %arg20: memref<1x1x32xf32, #tpu.memory_space<vmem>>, %arg21: memref<1x1x32xf32, #tpu.memory_space<vmem>>, %arg22: memref<1x1x32xf32, #tpu.memory_space<vmem>>, %arg23: memref<1x1x32xf32, #tpu.memory_space<vmem>>, %arg24: memref<8x32xf32, #tpu.memory_space<vmem>>) attributes {dimension_semantics = [#tpu.dimension_semantics<parallel>, #tpu.dimension_semantics<arbitrary>], iteration_bounds = array<i64: 2, 2>, scalar_prefetch = 0 : i64, scratch_operands = 1 : i64, tpu.core_type = #tpu.core_type<tc>, window_params = [{transform_indices = @transform_0, window_bounds = array<i64: 1, 8, 32>}, {transform_indices = @transform_1, window_bounds = array<i64: 1, 1, 8>}, {pipeline_mode = #tpu.pipeline_mode<synchronous>, transform_indices = @transform_2, window_bounds = array<i64: 8, 32>}, {pipeline_mode = #tpu.pipeline_mode<synchronous>, transform_indices = @transform_3, window_bounds = array<i64: 1, 32>}, {pipeline_mode = #tpu.pipeline_mode<synchronous>, transform_indices = @transform_4, window_bounds = array<i64: 1, 32>}, {transform_indices = @transform_5, window_bounds = array<i64: 1, 32, 32>}, {transform_indices = @transform_6, window_bounds = array<i64: 1, 1, 32>}, {transform_indices = @transform_7, window_bounds = array<i64: 1, 32, 32>}, {transform_indices = @transform_8, window_bounds = array<i64: 1, 1, 32>}, {transform_indices = @transform_9, window_bounds = array<i64: 1, 32, 32>}, {transform_indices = @transform_10, window_bounds = array<i64: 1, 1, 32>}, {transform_indices = @transform_11, window_bounds = array<i64: 1, 32, 32>}, {transform_indices = @transform_12, window_bounds = array<i64: 1, 1, 32>}, {transform_indices = @transform_13, window_bounds = array<i64: 1, 1, 32>}, {transform_indices = @transform_14, window_bounds = array<i64: 1, 1, 32>}, {transform_indices = @transform_15, window_bounds = array<i64: 1, 32, 64>}, {transform_indices = @transform_16, window_bounds = array<i64: 1, 1, 64>}, {transform_indices = @transform_17, window_bounds = array<i64: 1, 64, 32>}, {transform_indices = @transform_18, window_bounds = array<i64: 1, 1, 32>}, {transform_indices = @transform_19, window_bounds = array<i64: 1, 1, 32>}, {transform_indices = @transform_20, window_bounds = array<i64: 1, 1, 32>}, {transform_indices = @transform_21, window_bounds = array<i64: 1, 1, 32>}]} {
    %c0_i32 = arith.constant 0 : i32
    %0 = arith.cmpi eq, %arg1, %c0_i32 : i32
    %1 = arith.extui %0 : i1 to i32
    %c0_i32_0 = arith.constant 0 : i32
    %2 = arith.cmpi ne, %1, %c0_i32_0 : i32
    scf.if %2 {
      %c0_80 = arith.constant 0 : index
      %c0_81 = arith.constant 0 : index
      %c0_82 = arith.constant 0 : index
      %152 = vector.load %arg2[%c0_80, %c0_81, %c0_82] : memref<1x8x32xf32, #tpu.memory_space<vmem>>, vector<1x8x32xf32>
      %153 = vector.shape_cast %152 : vector<1x8x32xf32> to vector<8x32xf32>
      %c0_83 = arith.constant 0 : index
      %c0_84 = arith.constant 0 : index
      %154 = vector.load %arg4[%c0_83, %c0_84] : memref<8x32xf32, #tpu.memory_space<vmem>>, vector<8x32xf32>
      %155 = arith.addf %153, %154 : vector<8x32xf32>
      %c0_85 = arith.constant 0 : index
      %c0_86 = arith.constant 0 : index
      %156 = vector.load %arg5[%c0_85, %c0_86] : memref<1x32xf32, #tpu.memory_space<vmem>>, vector<1x32xf32>
      %c0_87 = arith.constant 0 : index
      %c0_88 = arith.constant 0 : index
      %157 = vector.load %arg6[%c0_87, %c0_88] : memref<1x32xf32, #tpu.memory_space<vmem>>, vector<1x32xf32>
      %cst_89 = arith.constant dense<0.000000e+00> : vector<8xf32>
      %158 = vector.multi_reduction <add>, %155, %cst_89 [1] : vector<8x32xf32> to vector<8xf32>
      %159 = vector.shape_cast %158 : vector<8xf32> to vector<8x1xf32>
      %cst_90 = arith.constant 3.200000e+01 : f32
      %160 = vector.broadcast %cst_90 : f32 to vector<8x1xf32>
      %161 = arith.divf %159, %160 : vector<8x1xf32>
      %162 = vector.broadcast %161 : vector<8x1xf32> to vector<8x32xf32>
      %163 = arith.subf %155, %162 : vector<8x32xf32>
      %164 = arith.mulf %163, %163 : vector<8x32xf32>
      %cst_91 = arith.constant dense<0.000000e+00> : vector<8xf32>
      %165 = vector.multi_reduction <add>, %164, %cst_91 [1] : vector<8x32xf32> to vector<8xf32>
      %166 = vector.shape_cast %165 : vector<8xf32> to vector<8x1xf32>
      %cst_92 = arith.constant 3.200000e+01 : f32
      %167 = vector.broadcast %cst_92 : f32 to vector<8x1xf32>
      %168 = arith.divf %166, %167 : vector<8x1xf32>
      %169 = vector.broadcast %161 : vector<8x1xf32> to vector<8x32xf32>
      %170 = arith.subf %155, %169 : vector<8x32xf32>
      %cst_93 = arith.constant 9.99999996E-13 : f32
      %171 = vector.broadcast %cst_93 : f32 to vector<8x1xf32>
      %172 = arith.addf %168, %171 : vector<8x1xf32>
      %173 = math.rsqrt %172 : vector<8x1xf32>
      %174 = vector.broadcast %173 : vector<8x1xf32> to vector<8x32xf32>
      %175 = arith.mulf %170, %174 : vector<8x32xf32>
      %176 = vector.broadcast %156 : vector<1x32xf32> to vector<8x32xf32>
      %177 = arith.mulf %175, %176 : vector<8x32xf32>
      %178 = vector.broadcast %157 : vector<1x32xf32> to vector<8x32xf32>
      %179 = arith.addf %177, %178 : vector<8x32xf32>
      %c0_94 = arith.constant 0 : index
      %c0_95 = arith.constant 0 : index
      %180 = vector.load %arg24[%c0_94, %c0_95] : memref<8x32xf32, #tpu.memory_space<vmem>>, vector<8x32xf32>
      tpu.vector_store %arg24[%c0_94, %c0_95], %179 {strides = array<i32>} : memref<8x32xf32, #tpu.memory_space<vmem>>, vector<8x32xf32>,
    } else {
    }
    %c0 = arith.constant 0 : index
    %c0_1 = arith.constant 0 : index
    %3 = vector.load %arg24[%c0, %c0_1] : memref<8x32xf32, #tpu.memory_space<vmem>>, vector<8x32xf32>
    %4 = arith.truncf %3 : vector<8x32xf32> to vector<8x32xbf16>
    %c0_2 = arith.constant 0 : index
    %c0_3 = arith.constant 0 : index
    %c0_4 = arith.constant 0 : index
    %5 = vector.load %arg7[%c0_2, %c0_3, %c0_4] : memref<1x32x32xbf16, #tpu.memory_space<vmem>>, vector<1x32x32xbf16>
    %6 = vector.shape_cast %5 : vector<1x32x32xbf16> to vector<32x32xbf16>
    %cst = arith.constant dense<0.000000e+00> : vector<8x32xf32>
    %7 = tpu.matmul %4, %6, %cst {dimension_numbers = #tpu.dot_dimension_numbers<[1], [0], [0], [1], [0, 0, 1, 1], [], []>} : vector<8x32xbf16>, vector<32x32xbf16>, vector<8x32xf32> -> vector<8x32xf32>
    %c0_5 = arith.constant 0 : index
    %c0_6 = arith.constant 0 : index
    %c0_7 = arith.constant 0 : index
    %8 = vector.load %arg8[%c0_5, %c0_6, %c0_7] : memref<1x1x32xf32, #tpu.memory_space<vmem>>, vector<1x1x32xf32>
    %9 = vector.shape_cast %8 : vector<1x1x32xf32> to vector<1x32xf32>
    %10 = vector.broadcast %9 : vector<1x32xf32> to vector<8x32xf32>
    %11 = arith.addf %7, %10 : vector<8x32xf32>
    %c0_8 = arith.constant 0 : index
    %c0_9 = arith.constant 0 : index
    %c0_10 = arith.constant 0 : index
    %12 = vector.load %arg9[%c0_8, %c0_9, %c0_10] : memref<1x32x32xbf16, #tpu.memory_space<vmem>>, vector<1x32x32xbf16>
    %13 = vector.shape_cast %12 : vector<1x32x32xbf16> to vector<32x32xbf16>
    %cst_11 = arith.constant dense<0.000000e+00> : vector<8x32xf32>
    %14 = tpu.matmul %4, %13, %cst_11 {dimension_numbers = #tpu.dot_dimension_numbers<[1], [0], [0], [1], [0, 0, 1, 1], [], []>} : vector<8x32xbf16>, vector<32x32xbf16>, vector<8x32xf32> -> vector<8x32xf32>
    %c0_12 = arith.constant 0 : index
    %c0_13 = arith.constant 0 : index
    %c0_14 = arith.constant 0 : index
    %15 = vector.load %arg10[%c0_12, %c0_13, %c0_14] : memref<1x1x32xf32, #tpu.memory_space<vmem>>, vector<1x1x32xf32>
    %16 = vector.shape_cast %15 : vector<1x1x32xf32> to vector<1x32xf32>
    %17 = vector.broadcast %16 : vector<1x32xf32> to vector<8x32xf32>
    %18 = arith.addf %14, %17 : vector<8x32xf32>
    %c0_15 = arith.constant 0 : index
    %c0_16 = arith.constant 0 : index
    %c0_17 = arith.constant 0 : index
    %19 = vector.load %arg11[%c0_15, %c0_16, %c0_17] : memref<1x32x32xbf16, #tpu.memory_space<vmem>>, vector<1x32x32xbf16>
    %20 = vector.shape_cast %19 : vector<1x32x32xbf16> to vector<32x32xbf16>
    %cst_18 = arith.constant dense<0.000000e+00> : vector<8x32xf32>
    %21 = tpu.matmul %4, %20, %cst_18 {dimension_numbers = #tpu.dot_dimension_numbers<[1], [0], [0], [1], [0, 0, 1, 1], [], []>} : vector<8x32xbf16>, vector<32x32xbf16>, vector<8x32xf32> -> vector<8x32xf32>
    %c0_19 = arith.constant 0 : index
    %c0_20 = arith.constant 0 : index
    %c0_21 = arith.constant 0 : index
    %22 = vector.load %arg12[%c0_19, %c0_20, %c0_21] : memref<1x1x32xf32, #tpu.memory_space<vmem>>, vector<1x1x32xf32>
    %23 = vector.shape_cast %22 : vector<1x1x32xf32> to vector<1x32xf32>
    %24 = vector.broadcast %23 : vector<1x32xf32> to vector<8x32xf32>
    %25 = arith.addf %21, %24 : vector<8x32xf32>
    %26 = vector.shape_cast %11 : vector<8x32xf32> to vector<8x4x8xf32>
    %27 = tpu.transpose %26, [1, 0, 2] : vector<8x4x8xf32> -> vector<4x8x8xf32>
    %28 = arith.truncf %27 : vector<4x8x8xf32> to vector<4x8x8xbf16>
    %29 = vector.shape_cast %18 : vector<8x32xf32> to vector<8x4x8xf32>
    %30 = tpu.transpose %29, [1, 0, 2] : vector<8x4x8xf32> -> vector<4x8x8xf32>
    %31 = arith.truncf %30 : vector<4x8x8xf32> to vector<4x8x8xbf16>
    %32 = vector.shape_cast %25 : vector<8x32xf32> to vector<8x4x8xf32>
    %33 = tpu.transpose %32, [1, 0, 2] : vector<8x4x8xf32> -> vector<4x8x8xf32>
    %34 = arith.truncf %33 : vector<4x8x8xf32> to vector<4x8x8xbf16>
    "tpu.trace_start"() <{level = 10 : i32, message = "hqd,hkd->hqk"}> : () -> ()
    %cst_22 = arith.constant dense<0.000000e+00> : vector<4x8x8xf32>
    %35 = tpu.matmul %28, %31, %cst_22 {dimension_numbers = #tpu.dot_dimension_numbers<[2], [2], [1], [1], [0, 0, 0, 1, 1, 1], [0], [0]>} : vector<4x8x8xbf16>, vector<4x8x8xbf16>, vector<4x8x8xf32> -> vector<4x8x8xf32>
    "tpu.trace_stop"() : () -> ()
    %cst_23 = arith.constant 0.353553385 : f32
    %36 = vector.broadcast %cst_23 : f32 to vector<4x8x8xf32>
    %37 = arith.mulf %35, %36 : vector<4x8x8xf32>
    %c0_24 = arith.constant 0 : index
    %c0_25 = arith.constant 0 : index
    %c0_26 = arith.constant 0 : index
    %38 = vector.load %arg3[%c0_24, %c0_25, %c0_26] : memref<1x1x8xf32, #tpu.memory_space<vmem>>, vector<1x1x8xf32>
    %39 = vector.shape_cast %38 : vector<1x1x8xf32> to vector<1x8xf32>
    %40 = vector.shape_cast %39 : vector<1x8xf32> to vector<1x1x8xf32>
    %41 = vector.broadcast %40 : vector<1x1x8xf32> to vector<4x8x8xf32>
    %42 = arith.addf %37, %41 : vector<4x8x8xf32>
    %cst_27 = arith.constant dense<0xFF800000> : vector<4x8xf32>
    %43 = vector.multi_reduction <maximumf>, %42, %cst_27 [2] : vector<4x8x8xf32> to vector<4x8xf32>
    %44 = vector.shape_cast %43 : vector<4x8xf32> to vector<4x8x1xf32>
    %45 = vector.broadcast %44 : vector<4x8x1xf32> to vector<4x8x8xf32>
    %46 = arith.subf %42, %45 : vector<4x8x8xf32>
    %47 = math.exp %46 : vector<4x8x8xf32>
    %cst_28 = arith.constant dense<0.000000e+00> : vector<4x8xf32>
    %48 = vector.multi_reduction <add>, %47, %cst_28 [2] : vector<4x8x8xf32> to vector<4x8xf32>
    %49 = vector.shape_cast %48 : vector<4x8xf32> to vector<4x8x1xf32>
    %50 = tpu.reciprocal %49 {approx = true} : vector<4x8x1xf32> -> vector<4x8x1xf32>
    %51 = vector.broadcast %50 : vector<4x8x1xf32> to vector<4x8x8xf32>
    %52 = arith.mulf %47, %51 : vector<4x8x8xf32>
    %53 = arith.truncf %52 : vector<4x8x8xf32> to vector<4x8x8xbf16>
    "tpu.trace_start"() <{level = 10 : i32, message = "hqk,hkd->hqd"}> : () -> ()
    %cst_29 = arith.constant dense<0.000000e+00> : vector<4x8x8xf32>
    %54 = tpu.matmul %53, %34, %cst_29 {dimension_numbers = #tpu.dot_dimension_numbers<[2], [1], [1], [2], [0, 0, 0, 1, 1, 2], [0], [0]>} : vector<4x8x8xbf16>, vector<4x8x8xbf16>, vector<4x8x8xf32> -> vector<4x8x8xf32>
    "tpu.trace_stop"() : () -> ()
    %55 = tpu.transpose %54, [1, 0, 2] : vector<4x8x8xf32> -> vector<8x4x8xf32>
    %56 = vector.shape_cast %55 : vector<8x4x8xf32> to vector<8x32xf32>
    %57 = arith.truncf %56 : vector<8x32xf32> to vector<8x32xbf16>
    %c0_30 = arith.constant 0 : index
    %c0_31 = arith.constant 0 : index
    %c0_32 = arith.constant 0 : index
    %58 = vector.load %arg13[%c0_30, %c0_31, %c0_32] : memref<1x32x32xbf16, #tpu.memory_space<vmem>>, vector<1x32x32xbf16>
    %59 = vector.shape_cast %58 : vector<1x32x32xbf16> to vector<32x32xbf16>
    %cst_33 = arith.constant dense<0.000000e+00> : vector<8x32xf32>
    %60 = tpu.matmul %57, %59, %cst_33 {dimension_numbers = #tpu.dot_dimension_numbers<[1], [0], [0], [1], [0, 0, 1, 1], [], []>} : vector<8x32xbf16>, vector<32x32xbf16>, vector<8x32xf32> -> vector<8x32xf32>
    %c0_34 = arith.constant 0 : index
    %c0_35 = arith.constant 0 : index
    %c0_36 = arith.constant 0 : index
    %61 = vector.load %arg14[%c0_34, %c0_35, %c0_36] : memref<1x1x32xf32, #tpu.memory_space<vmem>>, vector<1x1x32xf32>
    %62 = vector.shape_cast %61 : vector<1x1x32xf32> to vector<1x32xf32>
    %63 = vector.broadcast %62 : vector<1x32xf32> to vector<8x32xf32>
    %64 = arith.addf %60, %63 : vector<8x32xf32>
    %65 = arith.addf %64, %3 : vector<8x32xf32>
    %c0_37 = arith.constant 0 : index
    %c0_38 = arith.constant 0 : index
    %c0_39 = arith.constant 0 : index
    %66 = vector.load %arg15[%c0_37, %c0_38, %c0_39] : memref<1x1x32xf32, #tpu.memory_space<vmem>>, vector<1x1x32xf32>
    %67 = vector.shape_cast %66 : vector<1x1x32xf32> to vector<1x32xf32>
    %c0_40 = arith.constant 0 : index
    %c0_41 = arith.constant 0 : index
    %c0_42 = arith.constant 0 : index
    %68 = vector.load %arg16[%c0_40, %c0_41, %c0_42] : memref<1x1x32xf32, #tpu.memory_space<vmem>>, vector<1x1x32xf32>
    %69 = vector.shape_cast %68 : vector<1x1x32xf32> to vector<1x32xf32>
    %cst_43 = arith.constant dense<0.000000e+00> : vector<8xf32>
    %70 = vector.multi_reduction <add>, %65, %cst_43 [1] : vector<8x32xf32> to vector<8xf32>
    %71 = vector.shape_cast %70 : vector<8xf32> to vector<8x1xf32>
    %cst_44 = arith.constant 3.200000e+01 : f32
    %72 = vector.broadcast %cst_44 : f32 to vector<8x1xf32>
    %73 = arith.divf %71, %72 : vector<8x1xf32>
    %74 = vector.broadcast %73 : vector<8x1xf32> to vector<8x32xf32>
    %75 = arith.subf %65, %74 : vector<8x32xf32>
    %76 = arith.mulf %75, %75 : vector<8x32xf32>
    %cst_45 = arith.constant dense<0.000000e+00> : vector<8xf32>
    %77 = vector.multi_reduction <add>, %76, %cst_45 [1] : vector<8x32xf32> to vector<8xf32>
    %78 = vector.shape_cast %77 : vector<8xf32> to vector<8x1xf32>
    %cst_46 = arith.constant 3.200000e+01 : f32
    %79 = vector.broadcast %cst_46 : f32 to vector<8x1xf32>
    %80 = arith.divf %78, %79 : vector<8x1xf32>
    %81 = vector.broadcast %73 : vector<8x1xf32> to vector<8x32xf32>
    %82 = arith.subf %65, %81 : vector<8x32xf32>
    %cst_47 = arith.constant 9.99999996E-13 : f32
    %83 = vector.broadcast %cst_47 : f32 to vector<8x1xf32>
    %84 = arith.addf %80, %83 : vector<8x1xf32>
    %85 = math.rsqrt %84 : vector<8x1xf32>
    %86 = vector.broadcast %85 : vector<8x1xf32> to vector<8x32xf32>
    %87 = arith.mulf %82, %86 : vector<8x32xf32>
    %88 = vector.broadcast %67 : vector<1x32xf32> to vector<8x32xf32>
    %89 = arith.mulf %87, %88 : vector<8x32xf32>
    %90 = vector.broadcast %69 : vector<1x32xf32> to vector<8x32xf32>
    %91 = arith.addf %89, %90 : vector<8x32xf32>
    %92 = arith.truncf %91 : vector<8x32xf32> to vector<8x32xbf16>
    %c0_48 = arith.constant 0 : index
    %c0_49 = arith.constant 0 : index
    %c0_50 = arith.constant 0 : index
    %93 = vector.load %arg17[%c0_48, %c0_49, %c0_50] : memref<1x32x64xbf16, #tpu.memory_space<vmem>>, vector<1x32x64xbf16>
    %94 = vector.shape_cast %93 : vector<1x32x64xbf16> to vector<32x64xbf16>
    %cst_51 = arith.constant dense<0.000000e+00> : vector<8x64xf32>
    %95 = tpu.matmul %92, %94, %cst_51 {dimension_numbers = #tpu.dot_dimension_numbers<[1], [0], [0], [1], [0, 0, 1, 1], [], []>} : vector<8x32xbf16>, vector<32x64xbf16>, vector<8x64xf32> -> vector<8x64xf32>
    %c0_52 = arith.constant 0 : index
    %c0_53 = arith.constant 0 : index
    %c0_54 = arith.constant 0 : index
    %96 = vector.load %arg18[%c0_52, %c0_53, %c0_54] : memref<1x1x64xf32, #tpu.memory_space<vmem>>, vector<1x1x64xf32>
    %97 = vector.shape_cast %96 : vector<1x1x64xf32> to vector<1x64xf32>
    %98 = vector.broadcast %97 : vector<1x64xf32> to vector<8x64xf32>
    %99 = arith.addf %95, %98 : vector<8x64xf32>
    %100 = arith.mulf %99, %99 : vector<8x64xf32>
    %101 = arith.mulf %99, %100 : vector<8x64xf32>
    %cst_55 = arith.constant 4.471500e-02 : f32
    %102 = vector.broadcast %cst_55 : f32 to vector<8x64xf32>
    %103 = arith.mulf %102, %101 : vector<8x64xf32>
    %104 = arith.addf %99, %103 : vector<8x64xf32>
    %cst_56 = arith.constant 0.797884583 : f32
    %105 = vector.broadcast %cst_56 : f32 to vector<8x64xf32>
    %106 = arith.mulf %105, %104 : vector<8x64xf32>
    %107 = math.tanh %106 : vector<8x64xf32>
    %cst_57 = arith.constant 1.000000e+00 : f32
    %108 = vector.broadcast %cst_57 : f32 to vector<8x64xf32>
    %109 = arith.addf %108, %107 : vector<8x64xf32>
    %cst_58 = arith.constant 5.000000e-01 : f32
    %110 = vector.broadcast %cst_58 : f32 to vector<8x64xf32>
    %111 = arith.mulf %110, %109 : vector<8x64xf32>
    %112 = arith.mulf %99, %111 : vector<8x64xf32>
    %113 = arith.truncf %112 : vector<8x64xf32> to vector<8x64xbf16>
    %c0_59 = arith.constant 0 : index
    %c0_60 = arith.constant 0 : index
    %c0_61 = arith.constant 0 : index
    %114 = vector.load %arg19[%c0_59, %c0_60, %c0_61] : memref<1x64x32xbf16, #tpu.memory_space<vmem>>, vector<1x64x32xbf16>
    %115 = vector.shape_cast %114 : vector<1x64x32xbf16> to vector<64x32xbf16>
    %cst_62 = arith.constant dense<0.000000e+00> : vector<8x32xf32>
    %116 = tpu.matmul %113, %115, %cst_62 {dimension_numbers = #tpu.dot_dimension_numbers<[1], [0], [0], [1], [0, 0, 1, 1], [], []>} : vector<8x64xbf16>, vector<64x32xbf16>, vector<8x32xf32> -> vector<8x32xf32>
    %c0_63 = arith.constant 0 : index
    %c0_64 = arith.constant 0 : index
    %c0_65 = arith.constant 0 : index
    %117 = vector.load %arg20[%c0_63, %c0_64, %c0_65] : memref<1x1x32xf32, #tpu.memory_space<vmem>>, vector<1x1x32xf32>
    %118 = vector.shape_cast %117 : vector<1x1x32xf32> to vector<1x32xf32>
    %119 = vector.broadcast %118 : vector<1x32xf32> to vector<8x32xf32>
    %120 = arith.addf %116, %119 : vector<8x32xf32>
    %121 = arith.addf %120, %91 : vector<8x32xf32>
    %c0_66 = arith.constant 0 : index
    %c0_67 = arith.constant 0 : index
    %c0_68 = arith.constant 0 : index
    %122 = vector.load %arg21[%c0_66, %c0_67, %c0_68] : memref<1x1x32xf32, #tpu.memory_space<vmem>>, vector<1x1x32xf32>
    %123 = vector.shape_cast %122 : vector<1x1x32xf32> to vector<1x32xf32>
    %c0_69 = arith.constant 0 : index
    %c0_70 = arith.constant 0 : index
    %c0_71 = arith.constant 0 : index
    %124 = vector.load %arg22[%c0_69, %c0_70, %c0_71] : memref<1x1x32xf32, #tpu.memory_space<vmem>>, vector<1x1x32xf32>
    %125 = vector.shape_cast %124 : vector<1x1x32xf32> to vector<1x32xf32>
    %cst_72 = arith.constant dense<0.000000e+00> : vector<8xf32>
    %126 = vector.multi_reduction <add>, %121, %cst_72 [1] : vector<8x32xf32> to vector<8xf32>
    %127 = vector.shape_cast %126 : vector<8xf32> to vector<8x1xf32>
    %cst_73 = arith.constant 3.200000e+01 : f32
    %128 = vector.broadcast %cst_73 : f32 to vector<8x1xf32>
    %129 = arith.divf %127, %128 : vector<8x1xf32>
    %130 = vector.broadcast %129 : vector<8x1xf32> to vector<8x32xf32>
    %131 = arith.subf %121, %130 : vector<8x32xf32>
    %132 = arith.mulf %131, %131 : vector<8x32xf32>
    %cst_74 = arith.constant dense<0.000000e+00> : vector<8xf32>
    %133 = vector.multi_reduction <add>, %132, %cst_74 [1] : vector<8x32xf32> to vector<8xf32>
    %134 = vector.shape_cast %133 : vector<8xf32> to vector<8x1xf32>
    %cst_75 = arith.constant 3.200000e+01 : f32
    %135 = vector.broadcast %cst_75 : f32 to vector<8x1xf32>
    %136 = arith.divf %134, %135 : vector<8x1xf32>
    %137 = vector.broadcast %129 : vector<8x1xf32> to vector<8x32xf32>
    %138 = arith.subf %121, %137 : vector<8x32xf32>
    %cst_76 = arith.constant 9.99999996E-13 : f32
    %139 = vector.broadcast %cst_76 : f32 to vector<8x1xf32>
    %140 = arith.addf %136, %139 : vector<8x1xf32>
    %141 = math.rsqrt %140 : vector<8x1xf32>
    %142 = vector.broadcast %141 : vector<8x1xf32> to vector<8x32xf32>
    %143 = arith.mulf %138, %142 : vector<8x32xf32>
    %144 = vector.broadcast %123 : vector<1x32xf32> to vector<8x32xf32>
    %145 = arith.mulf %143, %144 : vector<8x32xf32>
    %146 = vector.broadcast %125 : vector<1x32xf32> to vector<8x32xf32>
    %147 = arith.addf %145, %146 : vector<8x32xf32>
    %c0_77 = arith.constant 0 : index
    %c0_78 = arith.constant 0 : index
    %148 = vector.load %arg24[%c0_77, %c0_78] : memref<8x32xf32, #tpu.memory_space<vmem>>, vector<8x32xf32>
    tpu.vector_store %arg24[%c0_77, %c0_78], %147 {strides = array<i32>} : memref<8x32xf32, #tpu.memory_space<vmem>>, vector<8x32xf32>,
    %c1_i32 = arith.constant 1 : i32
    %149 = arith.cmpi eq, %arg1, %c1_i32 : i32
    %150 = arith.extui %149 : i1 to i32
    %c0_i32_79 = arith.constant 0 : i32
    %151 = arith.cmpi ne, %150, %c0_i32_79 : i32
    scf.if %151 {
      %152 = vector.extract_strided_slice %147 {offsets = [0, 0], sizes = [1, 32], strides = [1, 1]} : vector<8x32xf32> to vector<1x32xf32>
      %c0_80 = arith.constant 0 : index
      %c0_81 = arith.constant 0 : index
      %c0_82 = arith.constant 0 : index
      %153 = vector.load %arg23[%c0_80, %c0_81, %c0_82] : memref<1x1x32xf32, #tpu.memory_space<vmem>>, vector<1x1x32xf32>
      %154 = vector.shape_cast %153 : vector<1x1x32xf32> to vector<1x32xf32>
      %155 = vector.shape_cast %152 : vector<1x32xf32> to vector<1x1x32xf32>
      tpu.vector_store %arg23[%c0_80, %c0_81, %c0_82], %155 {strides = array<i32>} : memref<1x1x32xf32, #tpu.memory_space<vmem>>, vector<1x1x32xf32>,
    } else {
    }
    return
  }
  func.func @transform_0(%arg0: i32, %arg1: i32) -> (i32, i32, i32) {
    %c0_i32 = arith.constant 0 : i32
    %c0_i32_0 = arith.constant 0 : i32
    %c0_i32_1 = arith.constant 0 : i32
    return %arg0, %c0_i32, %c0_i32_0 : i32, i32, i32
  }
  func.func @transform_1(%arg0: i32, %arg1: i32) -> (i32, i32, i32) {
    %c0_i32 = arith.constant 0 : i32
    %c0_i32_0 = arith.constant 0 : i32
    %c0_i32_1 = arith.constant 0 : i32
    return %arg0, %c0_i32, %c0_i32_0 : i32, i32, i32
  }
  func.func @transform_2(%arg0: i32, %arg1: i32) -> (i32, i32) {
    %c0_i32 = arith.constant 0 : i32
    %c0_i32_0 = arith.constant 0 : i32
    %c0_i32_1 = arith.constant 0 : i32
    return %c0_i32, %c0_i32_0 : i32, i32
  }
  func.func @transform_3(%arg0: i32, %arg1: i32) -> (i32, i32) {
    %c0_i32 = arith.constant 0 : i32
    %c0_i32_0 = arith.constant 0 : i32
    %c0_i32_1 = arith.constant 0 : i32
    return %c0_i32, %c0_i32_0 : i32, i32
  }
  func.func @transform_4(%arg0: i32, %arg1: i32) -> (i32, i32) {
    %c0_i32 = arith.constant 0 : i32
    %c0_i32_0 = arith.constant 0 : i32
    %c0_i32_1 = arith.constant 0 : i32
    return %c0_i32, %c0_i32_0 : i32, i32
  }
  func.func @transform_5(%arg0: i32, %arg1: i32) -> (i32, i32, i32) {
    %c0_i32 = arith.constant 0 : i32
    %c0_i32_0 = arith.constant 0 : i32
    %c0_i32_1 = arith.constant 0 : i32
    return %arg1, %c0_i32, %c0_i32_0 : i32, i32, i32
  }
  func.func @transform_6(%arg0: i32, %arg1: i32) -> (i32, i32, i32) {
    %c0_i32 = arith.constant 0 : i32
    %c0_i32_0 = arith.constant 0 : i32
    %c0_i32_1 = arith.constant 0 : i32
    return %arg1, %c0_i32, %c0_i32_0 : i32, i32, i32
  }
  func.func @transform_7(%arg0: i32, %arg1: i32) -> (i32, i32, i32) {
    %c0_i32 = arith.constant 0 : i32
    %c0_i32_0 = arith.constant 0 : i32
    %c0_i32_1 = arith.constant 0 : i32
    return %arg1, %c0_i32, %c0_i32_0 : i32, i32, i32
  }
  func.func @transform_8(%arg0: i32, %arg1: i32) -> (i32, i32, i32) {
    %c0_i32 = arith.constant 0 : i32
    %c0_i32_0 = arith.constant 0 : i32
    %c0_i32_1 = arith.constant 0 : i32
    return %arg1, %c0_i32, %c0_i32_0 : i32, i32, i32
  }
  func.func @transform_9(%arg0: i32, %arg1: i32) -> (i32, i32, i32) {
    %c0_i32 = arith.constant 0 : i32
    %c0_i32_0 = arith.constant 0 : i32
    %c0_i32_1 = arith.constant 0 : i32
    return %arg1, %c0_i32, %c0_i32_0 : i32, i32, i32
  }
  func.func @transform_10(%arg0: i32, %arg1: i32) -> (i32, i32, i32) {
    %c0_i32 = arith.constant 0 : i32
    %c0_i32_0 = arith.constant 0 : i32
    %c0_i32_1 = arith.constant 0 : i32
    return %arg1, %c0_i32, %c0_i32_0 : i32, i32, i32
  }
  func.func @transform_11(%arg0: i32, %arg1: i32) -> (i32, i32, i32) {
    %c0_i32 = arith.constant 0 : i32
    %c0_i32_0 = arith.constant 0 : i32
    %c0_i32_1 = arith.constant 0 : i32
    return %arg1, %c0_i32, %c0_i32_0 : i32, i32, i32
  }
  func.func @transform_12(%arg0: i32, %arg1: i32) -> (i32, i32, i32) {
    %c0_i32 = arith.constant 0 : i32
    %c0_i32_0 = arith.constant 0 : i32
    %c0_i32_1 = arith.constant 0 : i32
    return %arg1, %c0_i32, %c0_i32_0 : i32, i32, i32
  }
  func.func @transform_13(%arg0: i32, %arg1: i32) -> (i32, i32, i32) {
    %c0_i32 = arith.constant 0 : i32
    %c0_i32_0 = arith.constant 0 : i32
    %c0_i32_1 = arith.constant 0 : i32
    return %arg1, %c0_i32, %c0_i32_0 : i32, i32, i32
  }
  func.func @transform_14(%arg0: i32, %arg1: i32) -> (i32, i32, i32) {
    %c0_i32 = arith.constant 0 : i32
    %c0_i32_0 = arith.constant 0 : i32
    %c0_i32_1 = arith.constant 0 : i32
    return %arg1, %c0_i32, %c0_i32_0 : i32, i32, i32
  }
  func.func @transform_15(%arg0: i32, %arg1: i32) -> (i32, i32, i32) {
    %c0_i32 = arith.constant 0 : i32
    %c0_i32_0 = arith.constant 0 : i32
    %c0_i32_1 = arith.constant 0 : i32
    return %arg1, %c0_i32, %c0_i32_0 : i32, i32, i32
  }
  func.func @transform_16(%arg0: i32, %arg1: i32) -> (i32, i32, i32) {
    %c0_i32 = arith.constant 0 : i32
    %c0_i32_0 = arith.constant 0 : i32
    %c0_i32_1 = arith.constant 0 : i32
    return %arg1, %c0_i32, %c0_i32_0 : i32, i32, i32
  }
  func.func @transform_17(%arg0: i32, %arg1: i32) -> (i32, i32, i32) {
    %c0_i32 = arith.constant 0 : i32
    %c0_i32_0 = arith.constant 0 : i32
    %c0_i32_1 = arith.constant 0 : i32
    return %arg1, %c0_i32, %c0_i32_0 : i32, i32, i32
  }
  func.func @transform_18(%arg0: i32, %arg1: i32) -> (i32, i32, i32) {
    %c0_i32 = arith.constant 0 : i32
    %c0_i32_0 = arith.constant 0 : i32
    %c0_i32_1 = arith.constant 0 : i32
    return %arg1, %c0_i32, %c0_i32_0 : i32, i32, i32
  }
  func.func @transform_19(%arg0: i32, %arg1: i32) -> (i32, i32, i32) {
    %c0_i32 = arith.constant 0 : i32
    %c0_i32_0 = arith.constant 0 : i32
    %c0_i32_1 = arith.constant 0 : i32
    return %arg1, %c0_i32, %c0_i32_0 : i32, i32, i32
  }
  func.func @transform_20(%arg0: i32, %arg1: i32) -> (i32, i32, i32) {
    %c0_i32 = arith.constant 0 : i32
    %c0_i32_0 = arith.constant 0 : i32
    %c0_i32_1 = arith.constant 0 : i32
    return %arg1, %c0_i32, %c0_i32_0 : i32, i32, i32
  }
  func.func @transform_21(%arg0: i32, %arg1: i32) -> (i32, i32, i32) {
    %c0_i32 = arith.constant 0 : i32
    %c0_i32_0 = arith.constant 0 : i32
    %c0_i32_1 = arith.constant 0 : i32
    return %arg0, %c0_i32, %c0_i32_0 : i32, i32, i32
  }
}

</mosaic_0001>

<bundles_post_ra>
// kernel: tpu_custom_call.1
= control target key start
LH: loop header
LB: loop body
LE: loop exit
PB: predicated region body
PF: predicated region fallthrough
CT: control target
= control target key end

     0   :  { %s4494_s0 = inlined_call_operand.hbm [shape: f32[2,8,32], index: 0, kind: input, shape index: {}]   ;;  %s4495_s1 = inlined_call_operand.hbm [shape: f32[2,1,8], index: 1, kind: input, shape index: {}]   ;;  %s4496_s2 = inlined_call_operand.hbm [shape: f32[8,32], index: 2, kind: input, shape index: {}]   ;;  %s4497_s3 = inlined_call_operand.hbm [shape: f32[1,32], index: 3, kind: input, shape index: {}]   ;;  %s4498_s4 = inlined_call_operand.hbm [shape: f32[1,32], index: 4, kind: input, shape index: {}]   ;;  %s4499_s5 = inlined_call_operand.vmem [shape: bf16[2,32,32], index: 5, kind: input, shape index: {}]   ;;  %s4500_s6 = inlined_call_operand.vmem [shape: f32[2,1,32], index: 6, kind: input, shape index: {}]   ;;  %s4501_s7 = inlined_call_operand.vmem [shape: bf16[2,32,32], index: 7, kind: input, shape index: {}]   ;;  %s4502_s8 = inlined_call_operand.vmem [shape: f32[2,1,32], index: 8, kind: input, shape index: {}]   ;;  %s4503_s9 = inlined_call_operand.vmem [shape: bf16[2,32,32], index: 9, kind: input, shape index: {}]   ;;  %s4504_s10 = inlined_call_operand.vmem [shape: f32[2,1,32], index: 10, kind: input, shape index: {}]   ;;  %s4505_s11 = inlined_call_operand.hbm [shape: bf16[2,32,32], index: 11, kind: input, shape index: {}]   ;;  %s4506_s12 = inlined_call_operand.vmem [shape: f32[2,1,32], index: 12, kind: input, shape index: {}]   ;;  %s4507_s13 = inlined_call_operand.vmem [shape: f32[2,1,32], index: 13, kind: input, shape index: {}]   ;;  %s4508_s14 = inlined_call_operand.vmem [shape: f32[2,1,32], index: 14, kind: input, shape index: {}]   ;;  %s4509_s15 = inlined_call_operand.hbm [shape: bf16[2,32,64], index: 15, kind: input, shape index: {}]   ;;  %s4510_s16 = inlined_call_operand.vmem [shape: f32[2,1,64], index: 16, kind: input, shape index: {}]   ;;  %s4511_s17 = inlined_call_operand.vmem [shape: bf16[2,64,32], index: 17, kind: input, shape index: {}]   ;;  %s4512_s18 = inlined_call_operand.vmem [shape: f32[2,1,32], index: 18, kind: input, shape index: {}]   ;;  %s4513_s19 = inlined_call_operand.vmem [shape: f32[2,1,32], index: 19, kind: input, shape index: {}]   ;;  %s4514_s20 = inlined_call_operand.vmem [shape: f32[2,1,32], index: 20, kind: input, shape index: {}]   ;;  %s4515_s21 = inlined_call_operand.hbm [shape: f32[2,1,32], index: 21, kind: output, shape index: {}]  }
   0x1   :  { %4538 = sst [smem:[#allocation37_spill]] %s4494_s0 }
   0x2   :  { %4539 = sst [smem:[#allocation38_spill]] %s4495_s1 }
   0x3   :  { %4540 = sst [smem:[#allocation39_spill]] %s4496_s2 }
   0x4   :  { %4541 = sst [smem:[#allocation40_spill]] %s4497_s3 }
   0x5   :  { %4542 = sst [smem:[#allocation41_spill]] %s4498_s4 }
   0x6   :  { %4543 = sst [smem:[#allocation42_spill]] %s4499_s5 }
   0x7   :  { %4544 = sst [smem:[#allocation43_spill]] %s4501_s7 }
   0x8   :  { %4545 = sst [smem:[#allocation44_spill]] %s4502_s8 }
   0x9   :  { %4546 = sst [smem:[#allocation45_spill]] %s4503_s9 }
   0xa   :  { %4547 = sst [smem:[#allocation46_spill]] %s4504_s10 }
   0xb   :  { %4548 = sst [smem:[#allocation47_spill]] %s4505_s11 }
   0xc   :  { %4549 = sst [smem:[#allocation48_spill]] %s4506_s12 }
   0xd   :  { %4550 = sst [smem:[#allocation49_spill]] %s4507_s13 }
   0xe   :  { %4551 = sst [smem:[#allocation50_spill]] %s4508_s14 }
   0xf   :  { %4552 = sst [smem:[#allocation51_spill]] %s4509_s15 }
  0x10   :  { %4553 = sst [smem:[#allocation52_spill]] %s4510_s16 }
  0x11   :  { %4554 = sst [smem:[#allocation53_spill]] %s4511_s17 }
  0x12   :  { %4555 = sst [smem:[#allocation54_spill]] %s4512_s18 }
  0x13   :  { %4556 = sst [smem:[#allocation55_spill]] %s4513_s19 }
  0x14   :  { %4557 = sst [smem:[#allocation56_spill]] %s4514_s20 }
  0x15   :  { %4558 = sst [smem:[#allocation57_spill]] %s4515_s21 }
  0x16   :  { %26 = vsyncpa [#allocation4], 0 }
  0x17   :  { %28 = vsyncpa [#allocation4 + $0x1], 0 }
  0x18   :  { %29 = vsyncpa [#allocation7], 0 }
  0x19   :  { %31 = vsyncpa [#allocation7 + $0x1], 0 }
  0x1a   :  { %32 = vsyncpa [#allocation10], 0 }
  0x1b   :  { %33 = vsyncpa [#allocation13], 0 }
  0x1c   :  { %35 = vsyncpa [#allocation13 + $0x1], 0 }
  0x1d   :  { %36 = vsyncpa [#allocation5], 0 }
  0x1e   :  { %38 = vsyncpa [#allocation5 + $0x1], 0  ;;  %s3819_s2 = smov 0   ;;  %s3821_s25 = smov 0  }
  0x1f   :  { %s3823_s26 = smov 0   ;;  %s3825_s27 = smov 0  }
  0x20   :  { %s3827_s3 = smov 0   ;;  %s3829_s28 = smov 0  }
  0x21   :  { %s3831_s29 = smov 0   ;;  %s3833_s0 = smov 0  }
  0x22   :  { %s3835_s4 = smov 0   ;;  %s3837_s30 = smov 0  }
  0x23   :  { %s3839_s5 = smov 0  }
  0x24 LB: > { %4559 = sst [smem:[#allocation22_spill]] %s3651_s25  ;;  %s3873_s22 = sadd.s32 4294967295, %s3687_s5   ;;  %s3687_s5 = sphi %s3839_s5, %s44_s5   ;;  %s3683_s30 = sphi %s3837_s30, %s4648_s30   ;;  %s3679_s4 = sphi %s3835_s4, %s4647_s4   ;;  %s3675_s0 = sphi %s3833_s0, %s4646_s0   ;;  %s3671_s29 = sphi %s3831_s29, %s4645_s29   ;;  %s3667_s28 = sphi %s3829_s28, %s4644_s28   ;;  %s3663_s3 = sphi %s3827_s3, %s4643_s3   ;;  %s3659_s27 = sphi %s3825_s27, %s4642_s27   ;;  %s3655_s26 = sphi %s3823_s26, %s4641_s26   ;;  %s3651_s25 = sphi %s3821_s25, %s4640_s25   ;;  %s3647_s2 = sphi %s3819_s2, %s4639_s2  }
  0x25   : > { %4560 = sst [smem:[#allocation23_spill]] %s3655_s26  ;;  %p347_p0 = scmp.ne.s32.totalorder %s3651_s25, %s3647_s2 }
  0x26   : > { %4561 = sst [smem:[#allocation24_spill]] %s3659_s27  ;;  %p4517_p1 = scmp.eq.s32.totalorder %s3873_s22, 0 }
  0x27   : > { %4562 = sst [smem:[#allocation25_spill]] %s3663_s3  ;;  %p2938_p2 = scmp.ge.s32.totalorder %s3687_s5, 1 }
  0x28   : > { %4563 = sst [smem:[#allocation26_spill]] %s3667_s28  ;;  %p618_p3 = scmp.lt.s32.totalorder %s3687_s5, 5 }
  0x29   : > { %4564 = sst [smem:[#allocation27_spill]] %s3675_s0  ;;  %p3881_p4 = por %p347_p0, %p4517_p1 }
  0x2a   : > { %4565 = sst [smem:[#allocation28_spill]] %s3679_s4  ;;  %p3885_p5 = pnand %p2938_p2, %p618_p3 }
  0x2b   : > { %4566 = sst [smem:[#allocation29_spill]] %s3683_s30  ;;  %s3689_s24 = smov [#allocation8]  }
  0x2c   : > { %4567 = sst [smem:[#allocation30_spill]] %s3687_s5  ;;  %s631_s21 = sshll.u32 %s3689_s24, 4  ;;  %s632_s21 = int_to_ptr.vmem [resolvable:$true] %s631_s21 }
  0x2d   : > { %s4568_s23 = scalar_select %p3881_p4, 1, 0 }
  0x2e   : > { %p3185_p6 = pneg %p3885_p5  ;;  %s3690_s0 = smov [#allocation9]  }
  0x2f   : > { %s642_s2 = sshll.u32 %s3690_s0, 4  ;;  %s3372_s19 = scalar_lea.vmem %s632_s21, 128  ;;  %s643_s2 = int_to_ptr.vmem [resolvable:$true] %s642_s2 }
  0x30   : > { %p3893_p7 = pnand %p3185_p6, %p4517_p1  ;;  %p3373_p9 = scmp.ne.s32.totalorder %s632_s21, %s3372_s19 }
  0x31   : > { %p3380_p12 = scmp.lt.s32.totalorder %s632_s21, %s632_s21  ;;  %p3381_p13 = scmp.lt.s32.totalorder %s3372_s19, %s3372_s19 }
  0x32   : > { %p3363_p8 = pneg %p3893_p7 }
  0x33   : > { %p3382_p0 = por %p3381_p13, %p3380_p12 }
  0x34   : > { %p3375_p10 = pnand %p3373_p9, %p3363_p8 }
  0x36   : > { %p3376_p11 = pneg %p3375_p10 }
  0x38   : > { %p3383_p2 = pnand %p3382_p0, %p3376_p11 }
  0x3a   : > { %3386 = shalt.err (!%p3383_p2)
}
  0x3b   : > { %s4571_s18 = sld [smem:[#allocation39_spill]]  ;;  %s3398_s17 = scalar_lea.vmem %s643_s2, 16 }
  0x3c   : > { %p3399_p3 = scmp.ne.s32.totalorder %s643_s2, %s3398_s17  ;;  %s3405_s16 = scalar_lea.vmem %s643_s2, 32 }
  0x3d   : > { %p3406_p9 = scmp.lt.s32.totalorder %s643_s2, %s643_s2  ;;  %p3407_p10 = scmp.lt.s32.totalorder %s3405_s16, %s3398_s17 }
  0x3e   : > { %p3401_p6 = pnand %p3399_p3, %p3363_p8 }
  0x3f   : > { %p3408_p4 = por %p3407_p10, %p3406_p9 }
  0x40   : > { %p3402_p1 = pneg %p3401_p6 }
  0x41   : > { %3188 = dma.hbm_to_vmem [thread:$0]  (!%p3893_p7), %s4571_s18, 128, %s632_s21, [#allocation7]  }
  0x42   : > { %p3409_p12 = pnand %p3408_p4, %p3402_p1 }
  0x44   : > { %3412 = shalt.err (!%p3409_p12)
}
  0x45   : > { %s4572_s13 = sld [smem:[#allocation40_spill]]  ;;  %s53_s16 = sadd.s32 1, %s3679_s4 }
  0x46   : > { %p71_p1 = scmp.eq.s32.totalorder %s3687_s5, 0  ;;  %p3917_p4 = scmp.ge.s32.totalorder %s53_s16, 2 }
  0x47   : > { %s334_s14 = sadd.s32 1, %s3655_s26  ;;  %p341_p11 = scmp.ne.s32.totalorder %s3655_s26, %s3651_s25 }
  0x48   : > { %p4519_p13 = scmp.lt.s32.totalorder %s3687_s5, 4  ;;  %s4650_s16 = smov (%p3917_p4, %s53_s16), 0 }
  0x49   : > { %4574 = sst [smem:[#allocation31_spill]] %s4650_s16  ;;  %p343_p0 = por %p341_p11, %p71_p1 }
  0x4a   : > { %s331_s18 = ssub.s32 %s3679_s4, %s4650_s16  ;;  %s743_s21 = sand.u32 1, %s3655_s26  }
  0x4b   : > { %3191 = dma.hbm_to_vmem [thread:$0]  (!%p3893_p7), %s4572_s13, 16, %s643_s2, [#allocation10]  }
  0x4c   : > { %s4520_s13 = sand.u32 1, %s3687_s5   ;;  %p332_p2 = scmp.eq.s32.totalorder %s331_s18, 0 }
  0x4d   : > { %s3935_s2 = sshll.u32 %s743_s21, 4  ;;  %s3021_s0 = sshll.u32 %s3679_s4, 8 }
  0x4e   : > { %s3939_s24 = scalar_select %p332_p2, %s3655_s26, %s334_s14  }
  0x4f   : > { %s4576_s11 = sld [smem:[#allocation47_spill]]  ;;  %s745_s9 = scalar_lea.vmem [#allocation12], %s3935_s2 }
  0x50   : > { %4575 = sst [smem:[#allocation32_spill]] %s3939_s24  ;;  %s752_s8 = sshll.u32 %s745_s9, 4  ;;  %s753_s8 = int_to_ptr.vmem [resolvable:$true] %s752_s8 }
  0x51   : > { %p3949_p3 = pnand %p4519_p13, %p343_p0  ;;  %s3955_s18 = scalar_lea.sflag [#allocation13], %s4520_s13 }
  0x52   : > { %s3426_s14 = scalar_lea.vmem %s753_s8, 256  ;;  %s3691_s9 = smov [#allocation12]  }
  0x53   : > { %p4529_p6 = pneg %p3949_p3  ;;  %p3427_p9 = scmp.ne.s32.totalorder %s753_s8, %s3426_s14 }
  0x54   : > { %s3431_s12 = sshll.u32 %s3691_s9, 4  ;;  %s3432_s12 = int_to_ptr.vmem [resolvable:$false] %s3431_s12 }
  0x55   : > { %s751_s10 = scalar_lea.hbm %s4576_s11, %s3021_s0  ;;  %p3429_p10 = pnand %p3427_p9, %p4529_p6 }
  0x56   : > { %s3433_s21 = scalar_lea.vmem %s3432_s12, 512  ;;  %p3434_p11 = scmp.lt.s32.totalorder %s753_s8, %s3432_s12 }
  0x57   : > { %p3430_p12 = pneg %p3429_p10  ;;  %p3435_p0 = scmp.lt.s32.totalorder %s3433_s21, %s3426_s14 }
  0x59   : > { %p3436_p2 = por %p3435_p0, %p3434_p11 }
  0x5b   : > { %p3437_p13 = pnand %p3436_p2, %p3430_p12 }
  0x5d   : > { %3440 = shalt.err (!%p3437_p13)
}
  0x5e   : > { %s4523_s19 = smov 64   ;;  %s4524_s13 = smov 4  }
  0x5f   : > { %3204 = dma.hbm_to_vmem [thread:$0]  (!%p3949_p3), %s751_s10, 256, %s753_s8, %s3955_s18, %s4523_s19, %s4523_s19, %s4524_s13  }
  0x60   : > { %s4578_s15 = sld [smem:[#allocation51_spill]]  ;;  %s784_s12 = scalar_lea.vmem [#allocation14], %s3935_s2 }
  0x61   : > { %s791_s21 = sshll.u32 %s784_s12, 4  ;;  %s3694_s16 = smov [#allocation11]   ;;  %s3976_s21 = int_to_ptr.vmem [resolvable:$true] %s791_s21 }
  0x62   : > { %s653_s24 = sshll.u32 %s3694_s16, 4  ;;  %s654_s24 = int_to_ptr.vmem [resolvable:$true] %s653_s24 }
  0x63   : > { %s3452_s26 = scalar_lea.vmem %s654_s24, 16  ;;  %s3459_s8 = scalar_lea.vmem %s654_s24, 32 }
  0x64   : > { %p3453_p13 = scmp.ne.s32.totalorder %s654_s24, %s3452_s26  ;;  %p3460_p12 = scmp.lt.s32.totalorder %s654_s24, %s654_s24 }
  0x65   : > { %p3461_p11 = scmp.lt.s32.totalorder %s3459_s8, %s3452_s26 }
  0x66   : > { %s3973_s14 = scalar_lea.hbm %s4578_s15, %s3021_s0  ;;  %p3455_p9 = pnand %p3453_p13, %p3363_p8 }
  0x67   : > { %p3462_p0 = por %p3461_p11, %p3460_p12 }
  0x68   : > { %p3456_p10 = pneg %p3455_p9 }
  0x6a   : > { %p3463_p2 = pnand %p3462_p0, %p3456_p10 }
  0x6c   : > { %3466 = shalt.err (!%p3463_p2)
}
  0x6d   : > { %s4579_s2 = sld [smem:[#allocation41_spill]]  ;;  %s2937_s26 = sadd.s32 4294967294, %s3687_s5  }
  0x6e   : > { %s56_s20 = sadd.s32 1, %s3683_s30  ;;  %s63_s16 = sadd.s32 1, %s3667_s28 }
  0x6f   : > { %s4652_s20 = smov (!%p3917_p4, %s56_s20), %s3683_s30  ;;  %p70_p8 = scmp.ne.s32.totalorder %s3667_s28, %s3663_s3 }
  0x70   : > { %p76_p13 = scmp.ne.s32.totalorder %s3663_s3, %s3659_s27  ;;  %p58_p9 = scmp.ge.s32.totalorder %s4652_s20, 2 }
  0x71   : > { %p605_p10 = scmp.eq.s32.totalorder %s3873_s22, 3  ;;  %p3999_p12 = por %p71_p1, %p70_p8 }
  0x72   : > { %p4581_p11 = scmp.eq.s32.totalorder %s3873_s22, 0  ;;  %s4654_s20 = smov (%p58_p9, %s4652_s20), 0 }
  0x73   : > { %3194 = dma.hbm_to_vmem [thread:$0]  (!%p3893_p7), %s4579_s2, 16, %s654_s24, [#allocation10]  }
  0x74   : > { %p4005_p7 = por %p4581_p11, %p76_p13  ;;  %4583 = sst [smem:[#allocation33_spill]] %s4654_s20 }
  0x75   : > { %p4011_p4 = por %p605_p10, %p70_p8  ;;  %p611_p0 = scmp.eq.s32.totalorder %s2937_s26, 3 }
  0x76   : > { %s60_s9 = ssub.s32 %s3683_s30, %s4654_s20  ;;  %s4018_s12 = sand.u32 1, %s3667_s28  }
  0x77   : > { %s4584_s17 = scalar_select %p4011_p4, 1, 0 }
  0x78   : > { %p61_p1 = scmp.eq.s32.totalorder %s60_s9, 0  ;;  %p4020_p2 = por %p611_p0, %p76_p13 }
  0x79   : > { %4585 = sst [smem:[#allocation34_spill]] %s4584_s17  ;;  %s2943_s10 = sshll.u32 %s4018_s12, 3 }
  0x7a   : > { %s4586_s8 = scalar_select %p4020_p2, 1, 0 }
  0x7b   : > { %s4026_s11 = scalar_select %p61_p1, %s3667_s28, %s63_s16  }
  0x7c   : > { %4587 = sst [smem:[#allocation35_spill]] %s4586_s8  ;;  %s2944_s2 = sshll.u32 %s3683_s30, 7 }
  0x7d   : > { %4588 = sst [smem:[#allocation36_spill]] %s4026_s11  ;;  %s668_s27 = scalar_lea.vmem [#allocation3], %s2943_s10 }
  0x7e   : > { %s4589_s15 = sld [smem:[#allocation37_spill]]  ;;  %s675_s26 = sshll.u32 %s668_s27, 4  ;;  %s676_s26 = int_to_ptr.vmem [resolvable:$true] %s675_s26 }
  0x7f   : > { %p4590_p8 = scmp.lt.s32.totalorder %s3687_s5, 4  ;;  %s2945_s9 = sshll.u32 %s3683_s30, 4 }
  0x80   : > { %s665_s8 = scalar_lea.sflag [#allocation4], %s4018_s12  ;;  %s3480_s16 = scalar_lea.vmem %s676_s26, 128 }
  0x81   : > { %p4036_p9 = pnand %p4590_p8, %p3999_p12  ;;  %p3481_p10 = scmp.ne.s32.totalorder %s676_s26, %s3480_s16 }
  0x83   : > { %p3469_p13 = pneg %p4036_p9 }
  0x84   : > { %s673_s4 = scalar_lea.hbm %s4589_s15, %s2944_s2  ;;  %s3695_s15 = smov [#allocation3]  }
  0x85   : > { %p3483_p11 = pnand %p3481_p10, %p3469_p13  ;;  %s3485_s27 = sshll.u32 %s3695_s15, 4  ;;  %s3486_s27 = int_to_ptr.vmem [resolvable:$false] %s3485_s27 }
  0x86   : > { %s3487_s13 = scalar_lea.vmem %s3486_s27, 256  ;;  %p3488_p12 = scmp.lt.s32.totalorder %s676_s26, %s3486_s27 }
  0x87   : > { %p3484_p0 = pneg %p3483_p11  ;;  %p3489_p1 = scmp.lt.s32.totalorder %s3487_s13, %s3480_s16 }
  0x89   : > { %p3490_p8 = por %p3489_p1, %p3488_p12 }
  0x8b   : > { %p3491_p6 = pnand %p3490_p8, %p3484_p0 }
  0x8d   : > { %3494 = shalt.err (!%p3491_p6)
}
  0x8e   : > { %3198 = dma.hbm_to_vmem [thread:$0]  (!%p4036_p9), %s673_s4, 128, %s676_s26, %s665_s8  }
  0x8f   : > { %s4592_s10 = sld [smem:[#allocation38_spill]]  ;;  %s685_s30 = scalar_lea.vmem [#allocation6], %s4018_s12 }
  0x90   : > { %s692_s11 = sshll.u32 %s685_s30, 4  ;;  %s4593_s15 = sand.u32 1, %s3687_s5   ;;  %s693_s11 = int_to_ptr.vmem [resolvable:$true] %s692_s11 }
  0x91   : > { %s683_s28 = scalar_lea.sflag [#allocation7], %s4593_s15  ;;  %s3508_s27 = scalar_lea.vmem %s693_s11, 16 }
  0x92   : > { %p3509_p10 = scmp.ne.s32.totalorder %s693_s11, %s3508_s27  ;;  %s3696_s16 = smov [#allocation6]  }
  0x93   : > { %s3513_s13 = sshll.u32 %s3696_s16, 4  ;;  %s3514_s13 = int_to_ptr.vmem [resolvable:$false] %s3513_s13 }
  0x94   : > { %p3511_p6 = pnand %p3509_p10, %p3469_p13  ;;  %s3515_s17 = scalar_lea.vmem %s3514_s13, 32 }
  0x95   : > { %s690_s2 = scalar_lea.hbm %s4592_s10, %s2945_s9  ;;  %p3516_p0 = scmp.lt.s32.totalorder %s693_s11, %s3514_s13 }
  0x96   : > { %p3512_p11 = pneg %p3511_p6  ;;  %p3517_p12 = scmp.lt.s32.totalorder %s3515_s17, %s3508_s27 }
  0x98   : > { %p3518_p1 = por %p3517_p12, %p3516_p0 }
  0x9a   : > { %p3519_p8 = pnand %p3518_p1, %p3512_p11 }
  0x9c   : > { %3522 = shalt.err (!%p3519_p8)
}
  0x9d   : > { %3201 = dma.hbm_to_vmem [thread:$0]  (!%p4036_p9), %s690_s2, 16, %s693_s11, %s683_s28  }
  0x9e   : > { %s3536_s4 = scalar_lea.vmem %s3976_s21, 256  ;;  %p4594_p13 = pneg %p3949_p3 }
  0x9f   : > { %p3537_p2 = scmp.ne.s32.totalorder %s3976_s21, %s3536_s4  ;;  %s3697_s30 = smov [#allocation14]  }
  0xa0   : > { %s3541_s12 = sshll.u32 %s3697_s30, 4  ;;  %s3542_s12 = int_to_ptr.vmem [resolvable:$false] %s3541_s12 }
  0xa1   : > { %p3539_p10 = pnand %p3537_p2, %p4594_p13  ;;  %s3543_s17 = scalar_lea.vmem %s3542_s12, 512 }
  0xa2   : > { %p3544_p0 = scmp.lt.s32.totalorder %s3976_s21, %s3542_s12  ;;  %p3545_p11 = scmp.lt.s32.totalorder %s3543_s17, %s3536_s4 }
  0xa3   : > { %p3540_p6 = pneg %p3539_p10 }
  0xa4   : > { %p3546_p12 = por %p3545_p11, %p3544_p0 }
  0xa6   : > { %p3547_p1 = pnand %p3546_p12, %p3540_p6 }
  0xa8   : > { %3550 = shalt.err (!%p3547_p1)
}
  0xa9   : > { %s4595_s20 = smov 4   ;;  %s4596_s8 = smov 64  }
  0xaa   : > { %3207 = dma.hbm_to_vmem [thread:$0]  (!%p3949_p3), %s3973_s14, 256, %s3976_s21, %s3955_s18, %s4596_s8, %s4596_s8, %s4595_s20  }
  0xab   : > { %835 = sbr.rel (%p3885_p5) target bundleno = 3034 (0xbda), region = 104  ;;  %s4077_s28 = sand.u32 (!%p3885_p5), 1, %s3663_s3  }
  0xac   : > { %s2953_s11 = sshll.u32 (!%p3885_p5), %s4077_s28, 3  ;;  %s838_s26 = scalar_lea.sflag (!%p3885_p5), [#allocation4], %s4077_s28 }
  0xad   : > { %s4081_s9 = scalar_lea.vmem (!%p3885_p5), [#allocation3], %s2953_s11 }
  0xb0   : > { %3622 = dma.done.wait (%p4005_p7), %s838_s26, 128  }
  0xb1   : > { %3624 = vsyncadd (%p4005_p7), %s838_s26, 4294967168  ;;  %s846_s7 = sand.u32 1, %s3873_s22  }
  0xb2   : > { %s847_s1 = scalar_lea.sflag [#allocation7], %s846_s7 }
  0xb3   : > { %3626 = dma.done.wait (%p4005_p7), %s847_s1, 16  }
  0xb4   : > { %3628 = vsyncadd (%p4005_p7), %s847_s1, 4294967280  ;;  %p4597_p5 = scmp.eq.s32.totalorder %s3873_s22, 0 }
  0xb6   : > { %3630 = dma.done.wait (%p4597_p5), [#allocation7], 128   ;;  %p4598_p3 = pmov %p4597_p5 }
  0xb8   : > { %3632 = vsyncadd (%p4598_p3), [#allocation7], 4294967168  ;;  %p4599_p2 = pmov %p4598_p3 }
  0xba   : > { %3634 = dma.done.wait (%p4599_p2), [#allocation10], 32   ;;  %p4600_p9 = pmov %p4599_p2 }
  0xbb   : > { %s868_s14 = sand.u32 1, %s3651_s25   ;;  %s867_s24 = scalar_lea.sflag [#allocation13], %s846_s7 }
  0xbc   : > { %3636 = vsyncadd (%p4600_p9), [#allocation10], 4294967264  ;;  %s4102_s21 = sshll.u32 %s868_s14, 4  ;;  %p4601_p7 = scmp.ne.s32.totalorder %s4568_s23, 0 }
  0xbe   : > { %3638 = dma.done.wait (%p4601_p7), %s867_s24, 512  }
  0xbf   : > { %3640 = vsyncadd (%p4601_p7), %s867_s24, 4294966784  ;;  %p1001_p8 = scmp.lt.s32.totalorder %s3671_s29, 1  ;;  %s4602_s16 = sld [smem:[#allocation42_spill]] }
  0xc0   : > { %s4603_s12 = sld [smem:[#allocation43_spill]]  ;;  %s879_s26 = scalar_lea.vmem [#allocation14], %s4102_s21 }
  0xc1   : > { %s4111_s0 = scalar_select %p1001_p8, %s3671_s29, 1 }
  0xc2   : > { %s4605_s14 = sld [smem:[#allocation45_spill]]  ;;  %s1000_s7 = scalar_lea.vmem [#allocation15], %s4077_s28 }
  0xc3   : > { %s3023_s22 = sshll.u32 %s4111_s0, 4  ;;  %s4606_s15 = sld [smem:[#allocation46_spill]] }
  0xc4   : > { %s4611_s10 = sld [smem:[#allocation53_spill]]  ;;  %p2967_p13 = scmp.ne.s32.totalorder %s3671_s29, 0 }
  0xc5   : > { %s4121_s13 = scalar_lea.vmem %s4602_s16, %s3023_s22  ;;  %s4612_s16 = sld [smem:[#allocation54_spill]] }
  0xc6   : > { %s4126_s17 = scalar_lea.vmem %s4603_s12, %s3023_s22  ;;  %s4613_s12 = sld [smem:[#allocation55_spill]] }
  0xc7   : > { %s4614_s8 = sld [smem:[#allocation56_spill]] }
  0xc8   : > { %s4135_s24 = scalar_lea.vmem %s4605_s14, %s3023_s22  ;;  %s4610_s22 = sld [smem:[#allocation52_spill]] }
  0xc9   : > { %s1024_s27 = scalar_lea.vmem %s4606_s15, %s4111_s0  ;;  %s3026_s14 = sshll.u32 %s4111_s0, 5 }
  0xca   : > { %s4161_s15 = scalar_lea.vmem %s4611_s10, %s3026_s14  ;;  %1055 = sbr.rel (%p2967_p13) target bundleno = 519 (0x207), region = 136 }
  0xcb   : > { %s1044_s2 = scalar_lea.vmem %s4612_s16, %s4111_s0 }
  0xcc   : > { %s1047_s3 = scalar_lea.vmem %s4613_s12, %s4111_s0 }
  0xcd   : > { %s1050_s11 = scalar_lea.vmem %s4614_s8, %s4111_s0 }
  0xce   : > { %s1036_s1 = scalar_lea.vmem %s4610_s22, %s4111_s0 }
  0xcf   : > { %v1056_v0 = vld [vmem:[%s4081_s9] sm:$0xff]  ;;  %v1057_v1 = vld [vmem:[#allocation8] sm:$0xff]  ;;  %vm1061_vm0 = vcmask 261120   ;;  %v2968_v13 = vld [vmem:[#allocation9] ss:$0 sm:$0xff] }
  0xd0   : > { %v1058_v2 = vadd.f32 %v1057_v1, %v1056_v0  ;;  %v2969_v15 = vld [vmem:[#allocation11] ss:$0 sm:$0xff] }
  0xd2   : > { %v1062_v3 = vsel %vm1061_vm0, %v1058_v2, 0.0 }
  0xd3   : > { %1063 = vadd.xlane.f32.xlu0 %v1062_v3 }
 0x15c   : > { %v1064_v4 = vpop.xlane.xlu0 %1063 }
 0x15d   : > { %v1066_v5 = vmul.f32 0.03125, %v1064_v4 }
 0x15f   : > { %v1067_v6 = vsub.f32 %v1058_v2, %v1066_v5 }
 0x161   : > { %v1068_v7 = vmul.f32 %v1067_v6, %v1067_v6 }
 0x163   : > { %v1069_v8 = vsel %vm1061_vm0, %v1068_v7, 0.0 }
 0x164   : > { %1070 = vadd.xlane.f32.xlu0 %v1069_v8 }
 0x1ed   : > { %v1071_v9 = vpop.xlane.xlu0 %1070 }
 0x1ee   : > { %v1072_v10 = vmul.f32 0.03125, %v1071_v9 }
 0x1f0   : > { %v1073_v11 = vadd.f32 1e-12, %v1072_v10 }
 0x1f2   : > { %3323 = vrsqrt.f32 %v1073_v11 }
 0x1ff   : > { %v3324_v12 = vpop.eup %3323 }
 0x200   : > { %v1075_v14 = vmul.f32 %v3324_v12, %v1067_v6 }
 0x202   : > { %v1082_v16 = vmul.f32 %v2968_v13, %v1075_v14 }
 0x204   : > { %v1089_v17 = vadd.f32 %v2969_v15, %v1082_v16 }
 0x206   : > { %1090 = vst.msk [vmem:[#allocation2] sm:$0xff] %vm1061_vm0, %v1089_v17 }
 0x207 PF: > { %v3325_v18 = vld [vmem:[%s4126_s17 + $0x8] sm:$0xff]   ;;  %v3698_v19 = vmov 0.0   ;;  %v3327_v21 = vld [vmem:[%s4126_s17] sm:$0xff]   ;;  %vm3699_vm1 = vmmov 0   ;;  %vm1116_vm2 = vcmask 261120   ;;  %s4617_s23 = scalar_lea.vmem %s4500_s6, %s4111_s0  ;;  %s3700_s10 = smov 104   ;;  %v1301_v41 = vlaneseq }
 0x208   : > { %3071 = vmatprep.subr.bf16.mxu1 %v3698_v19  ;;  %3063 = vmatprep.subr.bf16.mxu0 %v3698_v19  ;;  %v3326_v20 = vld [vmem:[%s4121_s13 + $0x8] sm:$0xff]   ;;  %v3328_v22 = vld [vmem:[%s4121_s13] sm:$0xff]   ;;  %s4615_s13 = sld [smem:[#allocation44_spill]]  ;;  %s3701_s19 = smov 120   ;;  %v3703_v39 = vmov 1983009808  }
 0x209   : > { %3072 = vmatpush3.bf16.msra.mxu1 %v3325_v18  ;;  %3075 = vmatprep.mubr.msk.bf16.mxu1 %vm3699_vm1, %v3698_v19  ;;  %v2970_v27 = vld [vmem:[%s4617_s23] ss:$0 sm:$0xff]  ;;  %v3329_v28 = vld [vmem:[%s4135_s24 + $0x8] sm:$0xff]   ;;  %s3702_s18 = smov 112   ;;  %v1299_v40 = vunpack.c.l.s4 %v3703_v39  ;;  %v3704_v42 = vmov 1934713408  }
 0x20a   : > { %3064 = vmatpush3.bf16.msra.mxu0 %v3326_v20  ;;  %3073 = vmatprep.subr.bf16.mxu1 %v3698_v19  ;;  %v3330_v35 = vld [vmem:[%s4135_s24] sm:$0xff]   ;;  %v1331_v43 = vunpack.c.l.s4 %v3704_v42  ;;  %v1302_v45 = vshrl.u32 %v1301_v41, 7  ;;  %vm1736_vm3 = vcmask 64512   ;;  %s4618_s24 = scalar_lea.vmem [#allocation6], %s4077_s28  ;;  %vm1987_vm4 = vcmask 1043456   ;;  %s3705_s25 = smov 16  }
 0x20b   : > { %3065 = vmatprep.subr.bf16.mxu0 %v3698_v19  ;;  %3067 = vmatprep.mubr.msk.bf16.mxu0 %vm3699_vm1, %v3698_v19  ;;  %v1300_v44 = vunpack.c.0.s8 %v1299_v40  ;;  %s3706_s20 = smov 8   ;;  %s3707_s8 = smov 24   ;;  %vm2318_vm5 = vcmask 130048   ;;  %vm2320_vm6 = vcmask 195584   ;;  %vm2536_vm7 = vcmask 523264  }
 0x20c   : > { %v1332_v48 = vunpack.c.0.s8 %v1331_v43  ;;  %s4624_s23 = sld [smem:[#allocation49_spill]]  ;;  %p3017_p10 = scmp.ne.s32.totalorder %s3671_s29, 1 }
 0x20d   : > { %v4192_v23 = vld [vmem:[#allocation2] sm:$0xff]  ;;  %3074 = vmatpush3.bf16.msra.mxu1 %v3327_v21  ;;  %v4229_v49 = vsub.s32 %v1300_v44, %v1302_v45 }
 0x20e   : > { %v1092_v24 = vpack.c.bf16 %v4192_v23, %v4192_v23  ;;  %3066 = vmatpush3.bf16.msra.mxu0 %v3328_v22  ;;  %3087 = vmatprep.subr.bf16.mxu1 %v3698_v19  ;;  %s4616_s17 = scalar_lea.vmem %s4615_s13, %s4111_s0  ;;  %v4231_v56 = vsub.s32 %v1332_v48, %v1302_v45  ;;  %s4622_s13 = sld [smem:[#allocation48_spill]] }
 0x20f   : > { %3079 = vmatprep.subr.bf16.mxu0 %v3698_v19  ;;  %v2974_v25 = vld [vmem:[%s4616_s17] ss:$0 sm:$0xff] }
 0x210   : > { %3076 = vmatmul.mubr.msk.bf16.vlgmr.msra.gmra.mxu1 %vm1116_vm2, %v1092_v24 }
 0x211   : > { %3068 = vmatmul.mubr.msk.bf16.vlgmr.msra.gmra.mxu0 %vm1116_vm2, %v1092_v24  ;;  %3089 = vmatprep.mubr.msk.bf16.mxu1 %vm3699_vm1, %v3698_v19 }
 0x212   : > { %3083 = vmatprep.mubr.msk.bf16.mxu0 %vm3699_vm1, %v3698_v19  ;;  %3080 = vmatpush3.bf16.msra.mxu0 %v3329_v28 }
 0x213   : > { %3081 = vmatprep.subr.bf16.mxu0 %v3698_v19 }
 0x214   : > { %s4623_s17 = scalar_lea.vmem %s4622_s13, %s4111_s0 }
 0x216   : > { %3082 = vmatpush3.bf16.msra.mxu0 %v3330_v35 }
 0x217   : > { %3093 = vmatprep.subr.bf16.mxu0 %v3698_v19 }
 0x219   : > { %3084 = vmatmul.mubr.msk.bf16.vlgmr.msra.gmra.mxu0 %vm1116_vm2, %v1092_v24 }
 0x21a   : > { %3095 = vmatprep.mubr.msk.bf16.mxu0 %vm3699_vm1, %v3698_v19 }
 0x2d0   : > { %v1217_v26 = vpop.f32.mrf.mxu1 }
 0x2d1   : > { %v1218_v29 = vadd.f32 %v2974_v25, %v1217_v26  ;;  %v1154_v30 = vpop.f32.mrf.mxu0 }
 0x2d2   : > { %v3077_v31 = vpop.f32.mrf.mxu1  ;;  %v1155_v32 = vadd.f32 %v2970_v27, %v1154_v30 }
 0x2d3   : > { %1443 = vrot.lane.b32.xlu1 %v1218_v29, %s3700_s10  ;;  %1437 = vrot.lane.b32.xlu0 %v1218_v29, %s3701_s19  ;;  %v3069_v33 = vpop.f32.mrf.mxu0 }
 0x2d4   : > { %v1220_v34 = vpop.f32.mrf.mxu1 }
 0x2d5   : > { %v1157_v36 = vpop.f32.mrf.mxu0 }
 0x2d6   : > { %v3078_v37 = vpop.f32.mrf.mxu1 }
 0x2d7   : > { %1440 = vrot.lane.b32.xlu0 %v1218_v29, %s3702_s18  ;;  %1287 = vrot.lane.b32.xlu1 %v1155_v32, %s3701_s19  ;;  %v3070_v38 = vpop.f32.mrf.mxu0 }
 0x2db   : > { %1290 = vrot.lane.b32.xlu0 %v1155_v32, %s3702_s18  ;;  %1293 = vrot.lane.b32.xlu1 %v1155_v32, %s3700_s10 }
 0x345   : > { %v1444_v46 = vpop.permute.xlu1 %1443  ;;  %v1438_v47 = vpop.permute.xlu0 %1437 }
 0x346   : > { %v1462_v50 = vcombine.low %v1438_v47, %v1444_v46  ;;  %v1463_v51 = vcombine.high %v1438_v47, %v1444_v46 }
 0x348   : > { %v1470_v57 = vrot.slane %v1462_v50, %v4229_v49  ;;  %v1477_v58 = vrot.slane %v1463_v51, %v4229_v49 }
 0x349   : > { %v1441_v52 = vpop.permute.xlu0 %1440  ;;  %v1288_v53 = vpop.permute.xlu1 %1287 }
 0x34a   : > { %v1446_v54 = vcombine.low %v1218_v29, %v1441_v52  ;;  %v1447_v55 = vcombine.high %v1218_v29, %v1441_v52 }
 0x34c   : > { %v1454_v59 = vrot.slane %v1446_v54, %v4229_v49  ;;  %v1461_v60 = vrot.slane %v1447_v55, %v4229_v49 }
 0x34d   : > { %v1291_v61 = vpop.permute.xlu0 %1290  ;;  %v1294_v62 = vpop.permute.xlu1 %1293 }
 0x34e   : > { %v1478_v63 = vcombine.low %v1454_v59, %v1470_v57  ;;  %v1479_v0 = vcombine.high %v1454_v59, %v1470_v57  ;;  %v1494_v1 = vcombine.low %v1461_v60, %v1477_v58  ;;  %v1495_v2 = vcombine.high %v1461_v60, %v1477_v58 }
 0x34f   : > { %v1296_v3 = vcombine.low %v1155_v32, %v1291_v61  ;;  %v1297_v4 = vcombine.high %v1155_v32, %v1291_v61  ;;  %v1312_v5 = vcombine.low %v1288_v53, %v1294_v62  ;;  %v1313_v6 = vcombine.high %v1288_v53, %v1294_v62 }
 0x350   : > { %v1486_v7 = vrot.slane %v1478_v63, %v4231_v56  ;;  %v1493_v8 = vrot.slane %v1479_v0, %v4231_v56  ;;  %v1502_v9 = vrot.slane %v1494_v1, %v4231_v56  ;;  %v1509_v10 = vrot.slane %v1495_v2, %v4231_v56 }
 0x351   : > { %v1304_v11 = vrot.slane %v1296_v3, %v4229_v49  ;;  %v1311_v12 = vrot.slane %v1297_v4, %v4229_v49  ;;  %v1320_v13 = vrot.slane %v1312_v5, %v4229_v49  ;;  %v1327_v14 = vrot.slane %v1313_v6, %v4229_v49 }
 0x352   : > { %v1514_v15 = vcombine.low %v1486_v7, %v1493_v8  ;;  %v2984_v16 = vcombine.high %v1486_v7, %v1493_v8  ;;  %v1530_v17 = vcombine.low %v1502_v9, %v1509_v10  ;;  %v2985_v18 = vcombine.high %v1502_v9, %v1509_v10 }
 0x353   : > { %v1328_v20 = vcombine.low %v1304_v11, %v1320_v13  ;;  %v1329_v21 = vcombine.high %v1304_v11, %v1320_v13  ;;  %v1344_v22 = vcombine.low %v1311_v12, %v1327_v14  ;;  %v1345_v24 = vcombine.high %v1311_v12, %v1327_v14 }
 0x354   : > { %v1521_v25 = vrot.slane %v1514_v15, %v4229_v49  ;;  %v1529_v26 = vrot.slane %v2984_v16, %v4229_v49  ;;  %v1537_v27 = vrot.slane %v1530_v17, %v4229_v49  ;;  %v1545_v28 = vrot.slane %v2985_v18, %v4229_v49  ;;  %v1280_v15 = vpop.f32.mrf.mxu0 }
 0x355   : > { %v1336_v29 = vrot.slane %v1328_v20, %v4231_v56  ;;  %v1343_v30 = vrot.slane %v1329_v21, %v4231_v56  ;;  %v1352_v31 = vrot.slane %v1344_v22, %v4231_v56  ;;  %v1359_v32 = vrot.slane %v1345_v24, %v4231_v56  ;;  %v2992_v22 = vld [vmem:[%s4618_s24] ss:$0 sm:$0xff] }
 0x356   : > { %v1546_v33 = vcombine.low %v1521_v25, %v1529_v26  ;;  %v1562_v34 = vcombine.low %v1537_v27, %v1545_v28  ;;  %v1547_v35 = vcombine.high %v1521_v25, %v1529_v26  ;;  %v1563_v36 = vcombine.high %v1537_v27, %v1545_v28  ;;  %v3085_v16 = vpop.f32.mrf.mxu0 }
 0x357   : > { %v1364_v37 = vcombine.low %v1336_v29, %v1343_v30  ;;  %v2982_v38 = vcombine.high %v1336_v29, %v1343_v30  ;;  %v1380_v39 = vcombine.low %v1352_v31, %v1359_v32  ;;  %v2983_v40 = vcombine.high %v1352_v31, %v1359_v32 }
 0x358   : > { %v1554_v41 = vrot.slane %v1546_v33, %v4231_v56  ;;  %v1570_v42 = vrot.slane %v1562_v34, %v4231_v56  ;;  %v1561_v50 = vrot.slane %v1547_v35, %v4231_v56  ;;  %v1577_v51 = vrot.slane %v1563_v36, %v4231_v56  ;;  %v1283_v17 = vpop.f32.mrf.mxu0 }
 0x359   : > { %v1371_v43 = vrot.slane %v1364_v37, %v4229_v49  ;;  %v1379_v44 = vrot.slane %v2982_v38, %v4229_v49  ;;  %v1387_v45 = vrot.slane %v1380_v39, %v4229_v49  ;;  %v1395_v46 = vrot.slane %v2983_v40, %v4229_v49 }
 0x35a   : > { %v1578_v47 = vcombine.low %v1554_v41, %v1570_v42  ;;  %v1579_v48 = vcombine.high %v1554_v41, %v1570_v42  ;;  %v1580_v61 = vcombine.low %v1561_v50, %v1577_v51  ;;  %v1581_v62 = vcombine.high %v1561_v50, %v1577_v51  ;;  %v3086_v18 = vpop.f32.mrf.mxu0  ;;  %v2978_v51 = vld [vmem:[%s1024_s27] ss:$0 sm:$0xff]  ;;  %s4620_s27 = scalar_lea.vmem [#allocation12], %s4102_s21 }
 0x35b   : > { %v1396_v52 = vcombine.low %v1371_v43, %v1379_v44  ;;  %v1412_v53 = vcombine.low %v1387_v45, %v1395_v46  ;;  %v1397_v63 = vcombine.high %v1371_v43, %v1379_v44  ;;  %v1413_v0 = vcombine.high %v1387_v45, %v1395_v46  ;;  %s4621_s12 = smov %s4620_s27 }
 0x35c   : > { %v1582_v54 = vpack.c.bf16 %v1578_v47, %v1578_v47  ;;  %v1583_v55 = vpack.c.bf16 %v1579_v48, %v1579_v48  ;;  %v1584_v3 = vpack.c.bf16 %v1580_v61, %v1580_v61  ;;  %v1585_v4 = vpack.c.bf16 %v1581_v62, %v1581_v62 }
 0x35d   : > { %v1404_v57 = vrot.slane %v1396_v52, %v4231_v56  ;;  %v1420_v58 = vrot.slane %v1412_v53, %v4231_v56  ;;  %v1411_v7 = vrot.slane %v1397_v63, %v4231_v56  ;;  %v1427_v8 = vrot.slane %v1413_v0, %v4231_v56 }
 0x35e   : > { %v1741_v59 = vsel %vm1736_vm3, %v1582_v54, 0  ;;  %v1787_v60 = vsel %vm1736_vm3, %v1583_v55, 0  ;;  %v1833_v9 = vsel %vm1736_vm3, %v1584_v3, 0  ;;  %v1879_v10 = vsel %vm1736_vm3, %v1585_v4, 0 }
 0x35f   : > { %3088 = vmatpush3.bf16.xpose.msra.mxu1 %v1741_v59  ;;  %3094 = vmatpush3.bf16.xpose.msra.mxu0 %v1787_v60  ;;  %v1428_v1 = vcombine.low %v1404_v57, %v1420_v58  ;;  %v1429_v2 = vcombine.high %v1404_v57, %v1420_v58  ;;  %v1430_v11 = vcombine.low %v1411_v7, %v1427_v8 }
 0x360   : > { %3099 = vmatprep.subr.bf16.mxu1 %v3698_v19  ;;  %3105 = vmatprep.subr.bf16.mxu0 %v3698_v19  ;;  %v1431_v12 = vcombine.high %v1411_v7, %v1427_v8  ;;  %v1281_v52 = vadd.f32 %v2978_v51, %v1280_v15 }
 0x361   : > { %v1432_v5 = vpack.c.bf16 %v1428_v1, %v1428_v1  ;;  %v1433_v6 = vpack.c.bf16 %v1429_v2, %v1429_v2  ;;  %v1434_v13 = vpack.c.bf16 %v1430_v11, %v1430_v11 }
 0x362   : > { %v1435_v14 = vpack.c.bf16 %v1431_v12, %v1431_v12 }
 0x366   : > { %3090 = vmatmul.mubr.msk.bf16.vlgmr.msra.gmra.mxu1 %vm1736_vm3, %v1432_v5  ;;  %3096 = vmatmul.mubr.msk.bf16.vlgmr.msra.gmra.mxu0 %vm1736_vm3, %v1433_v6 }
 0x367   : > { %3100 = vmatpush3.bf16.xpose.msra.mxu1 %v1833_v9  ;;  %3106 = vmatpush3.bf16.xpose.msra.mxu0 %v1879_v10 }
 0x368   : > { %3101 = vmatprep.mubr.msk.bf16.mxu1 %vm3699_vm1, %v3698_v19  ;;  %3107 = vmatprep.mubr.msk.bf16.mxu0 %vm3699_vm1, %v3698_v19 }
 0x369   : > { %3111 = vmatprep.subr.bf16.mxu1 %v3698_v19  ;;  %3117 = vmatprep.subr.bf16.mxu0 %v3698_v19 }
 0x36e   : > { %3102 = vmatmul.mubr.msk.bf16.vlgmr.msra.gmra.mxu1 %vm1736_vm3, %v1434_v13  ;;  %3108 = vmatmul.mubr.msk.bf16.vlgmr.msra.gmra.mxu0 %vm1736_vm3, %v1435_v14 }
 0x36f   : > { %3113 = vmatprep.mubr.msk.bf16.mxu1 %vm3699_vm1, %v3698_v19  ;;  %3119 = vmatprep.mubr.msk.bf16.mxu0 %vm3699_vm1, %v3698_v19 }
 0x426   : > { %v1777_v20 = vpop.f32.mrf.mxu1  ;;  %v1823_v21 = vpop.f32.mrf.mxu0 }
 0x427   : > { %v1921_v24 = vmul.f32 0.35355338, %v1777_v20  ;;  %v1922_v25 = vmul.f32 0.35355338, %v1823_v21 }
 0x428   : > { %v3091_v26 = vpop.f32.mrf.mxu1  ;;  %v3097_v27 = vpop.f32.mrf.mxu0 }
 0x429   : > { %v1932_v28 = vadd.f32 %v2992_v22, %v1921_v24  ;;  %v1933_v29 = vadd.f32 %v2992_v22, %v1922_v25 }
 0x42a   : > { %v1780_v30 = vpop.f32.mrf.mxu1  ;;  %v1826_v31 = vpop.f32.mrf.mxu0 }
 0x42b   : > { %v1936_v32 = vsel %vm1736_vm3, %v1932_v28, -inf  ;;  %v1939_v33 = vsel %vm1736_vm3, %v1933_v29, -inf }
 0x42c   : > { %1937 = vmax.xlane.f32.xlu0 %v1936_v32  ;;  %v3092_v34 = vpop.f32.mrf.mxu1  ;;  %1940 = vmax.xlane.f32.xlu1 %v1939_v33  ;;  %v3098_v35 = vpop.f32.mrf.mxu0 }
 0x42e   : > { %v1869_v36 = vpop.f32.mrf.mxu1  ;;  %v1915_v37 = vpop.f32.mrf.mxu0 }
 0x42f   : > { %v1923_v38 = vmul.f32 0.35355338, %v1869_v36  ;;  %v1924_v39 = vmul.f32 0.35355338, %v1915_v37 }
 0x430   : > { %v3103_v40 = vpop.f32.mrf.mxu1  ;;  %v3109_v41 = vpop.f32.mrf.mxu0 }
 0x431   : > { %v1934_v42 = vadd.f32 %v2992_v22, %v1923_v38  ;;  %v1935_v46 = vadd.f32 %v2992_v22, %v1924_v39 }
 0x432   : > { %v1872_v43 = vpop.f32.mrf.mxu1  ;;  %v1918_v44 = vpop.f32.mrf.mxu0 }
 0x433   : > { %v1942_v45 = vsel %vm1736_vm3, %v1934_v42, -inf  ;;  %v1945_v50 = vsel %vm1736_vm3, %v1935_v46, -inf }
 0x434   : > { %1943 = vmax.xlane.f32.xlu0 %v1942_v45  ;;  %v3104_v47 = vpop.f32.mrf.mxu1  ;;  %v3110_v48 = vpop.f32.mrf.mxu0 }
 0x438   : > { %1946 = vmax.xlane.f32.xlu0 %v1945_v50 }
 0x43d   : > { %1587 = vrot.lane.b32.xlu1 %v1281_v52, %s3701_s19 }
 0x4b5   : > { %v1938_v53 = vpop.xlane.xlu0 %1937  ;;  %v1941_v54 = vpop.xlane.xlu1 %1940 }
 0x4b6   : > { %v1948_v55 = vsub.f32 %v1932_v28, %v1938_v53  ;;  %v1949_v57 = vsub.f32 %v1933_v29, %v1941_v54 }
 0x4b8   : > { %v1952_v58 = vmul.f32 1.442695, %v1948_v55  ;;  %v1954_v59 = vmul.f32 1.442695, %v1949_v57 }
 0x4b9   : > { %v1588_v10 = vpop.permute.xlu1 %1587 }
 0x4ba   : > { %3339 = vpow2.f32 %v1952_v58 }
 0x4bb   : > { %3341 = vpow2.f32 %v1954_v59 }
 0x4bd   : > { %v1944_v0 = vpop.xlane.xlu0 %1943 }
 0x4be   : > { %v1950_v2 = vsub.f32 %v1934_v42, %v1944_v0 }
 0x4c0   : > { %v1956_v4 = vmul.f32 1.442695, %v1950_v2 }
 0x4c1   : > { %v1947_v1 = vpop.xlane.xlu0 %1946 }
 0x4c2   : > { %v1951_v3 = vsub.f32 %v1935_v46, %v1947_v1  ;;  %3343 = vpow2.f32 %v1956_v4 }
 0x4c4   : > { %v1958_v5 = vmul.f32 1.442695, %v1951_v3 }
 0x4c6   : > { %3345 = vpow2.f32 %v1958_v5 }
 0x4c7   : > { %v4297_v60 = vpop.eup %3339 }
 0x4c8   : > { %v4299_v61 = vpop.eup %3341  ;;  %v1960_v62 = vsel %vm1736_vm3, %v4297_v60, 0.0 }
 0x4c9   : > { %1961 = vadd.xlane.f32.xlu1 %v1960_v62  ;;  %v1963_v63 = vsel %vm1736_vm3, %v4299_v61, 0.0 }
 0x4ca   : > { %1964 = vadd.xlane.f32.xlu0 %v1963_v63 }
 0x4cf   : > { %v4307_v6 = vpop.eup %3343 }
 0x4d0   : > { %v1966_v8 = vsel %vm1736_vm3, %v4307_v6, 0.0 }
 0x4d3   : > { %v4309_v7 = vpop.eup %3345 }
 0x4d4   : > { %v1969_v9 = vsel %vm1736_vm3, %v4309_v7, 0.0 }
 0x4da   : > { %1593 = vrot.lane.b32.xlu1 %v1281_v52, %s3700_s10  ;;  %s4625_s10 = scalar_lea.vmem %s4624_s23, %s4111_s0 }
 0x4e0   : > { %1590 = vrot.lane.b32.xlu0 %v1281_v52, %s3702_s18 }
 0x4fe   : > { %1967 = vadd.xlane.f32.xlu1 %v1966_v8 }
 0x4ff   : > { %1970 = vadd.xlane.f32.xlu0 %v1969_v9 }
 0x552   : > { %v1962_v11 = vpop.xlane.xlu1 %1961 }
 0x553   : > { %v1965_v12 = vpop.xlane.xlu0 %1964  ;;  %3347 = vrcp.f32 %v1962_v11 }
 0x554   : > { %3349 = vrcp.f32 %v1965_v12 }
 0x556   : > { %v1594_v13 = vpop.permute.xlu1 %1593 }
 0x557   : > { %v1612_v14 = vcombine.low %v1588_v10, %v1594_v13  ;;  %v1613_v15 = vcombine.high %v1588_v10, %v1594_v13  ;;  %v1591_v16 = vpop.permute.xlu0 %1590 }
 0x558   : > { %v1596_v17 = vcombine.low %v1281_v52, %v1591_v16  ;;  %v1597_v18 = vcombine.high %v1281_v52, %v1591_v16 }
 0x559   : > { %v1620_v20 = vrot.slane %v1612_v14, %v4229_v49  ;;  %v1627_v21 = vrot.slane %v1613_v15, %v4229_v49 }
 0x55a   : > { %v1604_v22 = vrot.slane %v1596_v17, %v4229_v49  ;;  %v1611_v24 = vrot.slane %v1597_v18, %v4229_v49 }
 0x55c   : > { %v1628_v25 = vcombine.low %v1604_v22, %v1620_v20  ;;  %v1629_v26 = vcombine.high %v1604_v22, %v1620_v20  ;;  %v1644_v27 = vcombine.low %v1611_v24, %v1627_v21  ;;  %v1645_v28 = vcombine.high %v1611_v24, %v1627_v21 }
 0x55e   : > { %v1636_v29 = vrot.slane %v1628_v25, %v4231_v56  ;;  %v1643_v30 = vrot.slane %v1629_v26, %v4231_v56  ;;  %v1652_v31 = vrot.slane %v1644_v27, %v4231_v56  ;;  %v1659_v32 = vrot.slane %v1645_v28, %v4231_v56 }
 0x560   : > { %v1664_v33 = vcombine.low %v1636_v29, %v1643_v30  ;;  %v2986_v34 = vcombine.high %v1636_v29, %v1643_v30  ;;  %v1680_v35 = vcombine.low %v1652_v31, %v1659_v32  ;;  %v2987_v36 = vcombine.high %v1652_v31, %v1659_v32  ;;  %v3348_v45 = vpop.eup %3347 }
 0x561   : > { %v3350_v51 = vpop.eup %3349  ;;  %v1976_v59 = vmul.f32 %v3348_v45, %v4297_v60 }
 0x562   : > { %v1671_v37 = vrot.slane %v1664_v33, %v4229_v49  ;;  %v1679_v38 = vrot.slane %v2986_v34, %v4229_v49  ;;  %v1687_v39 = vrot.slane %v1680_v35, %v4229_v49  ;;  %v1695_v40 = vrot.slane %v2987_v36, %v4229_v49 }
 0x563   : > { %v1977_v62 = vmul.f32 %v3350_v51, %v4299_v61  ;;  %v1980_v3 = vpack.c.bf16 %v1976_v59, %v1976_v59 }
 0x564   : > { %v1696_v41 = vcombine.low %v1671_v37, %v1679_v38  ;;  %v1712_v42 = vcombine.low %v1687_v39, %v1695_v40  ;;  %v1697_v43 = vcombine.high %v1671_v37, %v1679_v38  ;;  %v1713_v44 = vcombine.high %v1687_v39, %v1695_v40 }
 0x565   : > { %v1981_v4 = vpack.c.bf16 %v1977_v62, %v1977_v62 }
 0x566   : > { %v1704_v46 = vrot.slane %v1696_v41, %v4231_v56  ;;  %v1720_v47 = vrot.slane %v1712_v42, %v4231_v56  ;;  %v1711_v48 = vrot.slane %v1697_v43, %v4231_v56  ;;  %v1727_v50 = vrot.slane %v1713_v44, %v4231_v56  ;;  %v3331_v42 = vld [vmem:[%s4620_s27 + $0x8] sm:$0xff]  }
 0x568   : > { %v1728_v52 = vcombine.low %v1704_v46, %v1720_v47  ;;  %v1729_v53 = vcombine.high %v1704_v46, %v1720_v47  ;;  %v1730_v54 = vcombine.low %v1711_v48, %v1727_v50  ;;  %v1731_v55 = vcombine.high %v1711_v48, %v1727_v50 }
 0x56a   : > { %v1732_v57 = vpack.c.bf16 %v1728_v52, %v1728_v52  ;;  %v1733_v58 = vpack.c.bf16 %v1729_v53, %v1729_v53  ;;  %v1734_v1 = vpack.c.bf16 %v1730_v54, %v1730_v54  ;;  %v1735_v2 = vpack.c.bf16 %v1731_v55, %v1731_v55  ;;  %v3332_v53 = vld [vmem:[%s4621_s12] sm:$0xff]  }
 0x56c   : > { %v1989_v63 = vsel %vm1987_vm4, %v1732_v57, 0  ;;  %v2035_v0 = vsel %vm1987_vm4, %v1733_v58, 0  ;;  %v2081_v60 = vsel %vm1987_vm4, %v1734_v1, 0  ;;  %v2127_v61 = vsel %vm1987_vm4, %v1735_v2, 0 }
 0x56d   : > { %3112 = vmatpush3.bf16.msra.mxu1 %v1989_v63  ;;  %3118 = vmatpush3.bf16.msra.mxu0 %v2035_v0 }
 0x56e   : > { %3123 = vmatprep.subr.bf16.mxu1 %v3698_v19  ;;  %3129 = vmatprep.subr.bf16.mxu0 %v3698_v19 }
 0x570   : > { %3114 = vmatmul.mubr.msk.bf16.vlgmr.msra.gmra.mxu1 %vm1736_vm3, %v1980_v3  ;;  %3120 = vmatmul.mubr.msk.bf16.vlgmr.msra.gmra.mxu0 %vm1736_vm3, %v1981_v4 }
 0x571   : > { %3124 = vmatpush3.bf16.msra.mxu1 %v2081_v60  ;;  %3130 = vmatpush3.bf16.msra.mxu0 %v2127_v61 }
 0x572   : > { %3125 = vmatprep.mubr.msk.bf16.mxu1 %vm3699_vm1, %v3698_v19  ;;  %3131 = vmatprep.mubr.msk.bf16.mxu0 %vm3699_vm1, %v3698_v19 }
 0x573   : > { %3135 = vmatprep.subr.bf16.mxu1 %v3698_v19  ;;  %3143 = vmatprep.subr.bf16.mxu0 %v3698_v19 }
 0x587   : > { %v1968_v5 = vpop.xlane.xlu1 %1967 }
 0x588   : > { %3351 = vrcp.f32 %v1968_v5  ;;  %v1971_v8 = vpop.xlane.xlu0 %1970 }
 0x589   : > { %3353 = vrcp.f32 %v1971_v8 }
 0x595   : > { %v3352_v9 = vpop.eup %3351 }
 0x596   : > { %v3354_v10 = vpop.eup %3353  ;;  %v1978_v11 = vmul.f32 %v3352_v9, %v4307_v6 }
 0x597   : > { %v1979_v12 = vmul.f32 %v3354_v10, %v4309_v7 }
 0x598   : > { %v1982_v13 = vpack.c.bf16 %v1978_v11, %v1978_v11 }
 0x599   : > { %v1983_v14 = vpack.c.bf16 %v1979_v12, %v1979_v12 }
 0x59a   : > { %3126 = vmatmul.mubr.msk.bf16.vlgmr.msra.gmra.mxu1 %vm1736_vm3, %v1982_v13 }
 0x59b   : > { %3132 = vmatmul.mubr.msk.bf16.vlgmr.msra.gmra.mxu0 %vm1736_vm3, %v1983_v14  ;;  %3139 = vmatprep.mubr.msk.bf16.mxu1 %vm3699_vm1, %v3698_v19  ;;  %v2999_v14 = vld [vmem:[%s4623_s17] ss:$0 sm:$0xff] }
 0x59c   : > { %3147 = vmatprep.mubr.msk.bf16.mxu0 %vm3699_vm1, %v3698_v19  ;;  %3136 = vmatpush3.bf16.msra.mxu1 %v3331_v42  ;;  %v3005_v42 = vld [vmem:[%s1036_s1] ss:$0 sm:$0xff] }
 0x59d   : > { %3137 = vmatprep.subr.bf16.mxu1 %v3698_v19 }
 0x5a0   : > { %3138 = vmatpush3.bf16.msra.mxu1 %v3332_v53 }
 0x5a1   : > { %3151 = vmatprep.subr.bf16.mxu1 %v3698_v19 }
 0x630   : > { %v2025_v15 = vpop.f32.mrf.mxu1  ;;  %v2071_v16 = vpop.f32.mrf.mxu0 }
 0x632   : > { %v3115_v17 = vpop.f32.mrf.mxu1  ;;  %v3121_v18 = vpop.f32.mrf.mxu0 }
 0x634   : > { %v2028_v20 = vpop.f32.mrf.mxu1  ;;  %v2074_v6 = vpop.f32.mrf.mxu0 }
 0x636   : > { %v3116_v21 = vpop.f32.mrf.mxu1  ;;  %v3122_v7 = vpop.f32.mrf.mxu0 }
 0x65a   : > { %v2117_v22 = vpop.f32.mrf.mxu1 }
 0x65b   : > { %v2169_v24 = vcombine.low %v2025_v15, %v2117_v22  ;;  %v2170_v25 = vcombine.high %v2025_v15, %v2117_v22  ;;  %v2163_v26 = vpop.f32.mrf.mxu0 }
 0x65c   : > { %v2185_v27 = vcombine.low %v2071_v16, %v2163_v26  ;;  %v2186_v28 = vcombine.high %v2071_v16, %v2163_v26  ;;  %v3127_v29 = vpop.f32.mrf.mxu1 }
 0x65d   : > { %v2177_v30 = vrot.slane %v2169_v24, %v4229_v49  ;;  %v2184_v31 = vrot.slane %v2170_v25, %v4229_v49  ;;  %v3133_v32 = vpop.f32.mrf.mxu0 }
 0x65e   : > { %v2193_v33 = vrot.slane %v2185_v27, %v4229_v49  ;;  %v2200_v34 = vrot.slane %v2186_v28, %v4229_v49  ;;  %v2120_v35 = vpop.f32.mrf.mxu1  ;;  %v3333_v27 = vld [vmem:[%s879_s26 + $0x8] sm:$0xff]  }
 0x65f   : > { %v2166_v36 = vpop.f32.mrf.mxu0  ;;  %3144 = vmatpush3.bf16.msra.mxu0 %v3333_v27  ;;  %v3003_v32 = vld [vmem:[%s4625_s10] ss:$0 sm:$0xff] }
 0x660   : > { %v2201_v37 = vcombine.low %v2177_v30, %v2193_v33  ;;  %v2202_v38 = vcombine.high %v2177_v30, %v2193_v33  ;;  %v2217_v39 = vcombine.low %v2184_v31, %v2200_v34  ;;  %v2218_v40 = vcombine.high %v2184_v31, %v2200_v34  ;;  %v3128_v41 = vpop.f32.mrf.mxu1  ;;  %3145 = vmatprep.subr.bf16.mxu0 %v3698_v19 }
 0x661   : > { %v3134_v43 = vpop.f32.mrf.mxu0  ;;  %v3338_v41 = vld [vmem:[%s4161_s15] sm:$0xff]  }
 0x662   : > { %v2209_v44 = vrot.slane %v2201_v37, %v4231_v56  ;;  %v2216_v45 = vrot.slane %v2202_v38, %v4231_v56  ;;  %v2225_v46 = vrot.slane %v2217_v39, %v4231_v56  ;;  %v2232_v47 = vrot.slane %v2218_v40, %v4231_v56  ;;  %v3335_v38 = vld [vmem:[%s4161_s15 + $0x18] sm:$0xff]   ;;  %v3336_v39 = vld [vmem:[%s4161_s15 + $0x10] sm:$0xff]   ;;  %v3337_v40 = vld [vmem:[%s4161_s15 + $0x8] sm:$0xff]  }
 0x664   : > { %v2237_v48 = vcombine.low %v2209_v44, %v2216_v45  ;;  %v2997_v50 = vcombine.high %v2209_v44, %v2216_v45  ;;  %v2253_v51 = vcombine.low %v2225_v46, %v2232_v47  ;;  %v2998_v52 = vcombine.high %v2225_v46, %v2232_v47 }
 0x666   : > { %v2244_v54 = vrot.slane %v2237_v48, %v4229_v49  ;;  %v2252_v55 = vrot.slane %v2997_v50, %v4229_v49  ;;  %v2260_v57 = vrot.slane %v2253_v51, %v4229_v49  ;;  %v2268_v58 = vrot.slane %v2998_v52, %v4229_v49 }
 0x668   : > { %v2270_v59 = vcombine.high %v2244_v54, %v2252_v55  ;;  %v2286_v62 = vcombine.high %v2260_v57, %v2268_v58  ;;  %v2269_v63 = vcombine.low %v2244_v54, %v2252_v55  ;;  %v2285_v0 = vcombine.low %v2260_v57, %v2268_v58 }
 0x66a   : > { %v2284_v1 = vrot.slane %v2270_v59, %v4231_v56  ;;  %v2300_v2 = vrot.slane %v2286_v62, %v4231_v56  ;;  %v2277_v3 = vrot.slane %v2269_v63, %v4231_v56  ;;  %v2293_v4 = vrot.slane %v2285_v0, %v4231_v56  ;;  %v3009_v59 = vld [vmem:[%s1044_s2] ss:$0 sm:$0xff] }
 0x66c   : > { %v2303_v60 = vcombine.low %v2284_v1, %v2300_v2  ;;  %v2302_v61 = vcombine.high %v2277_v3, %v2293_v4  ;;  %v2301_v5 = vcombine.low %v2277_v3, %v2293_v4  ;;  %v2304_v49 = vcombine.high %v2284_v1, %v2300_v2 }
 0x66e   : > { %2310 = vrot.lane.b32.xlu1 %v2303_v60, %s3705_s25  ;;  %2306 = vrot.lane.b32.xlu0 %v2302_v61, %s3706_s20 }
 0x672   : > { %2314 = vrot.lane.b32.xlu1 %v2304_v49, %s3707_s8 }
 0x6e0   : > { %v2311_v8 = vpop.permute.xlu1 %2310  ;;  %v2307_v9 = vpop.permute.xlu0 %2306 }
 0x6e1   : > { %v2317_v10 = vsel %vm1736_vm3, %v2301_v5, %v2307_v9 }
 0x6e2   : > { %v2319_v12 = vsel %vm2318_vm5, %v2317_v10, %v2311_v8 }
 0x6e4   : > { %v2315_v11 = vpop.permute.xlu1 %2314 }
 0x6e5   : > { %v2321_v56 = vsel %vm2320_vm6, %v2319_v12, %v2315_v11 }
 0x6e6   : > { %v2322_v13 = vpack.c.bf16 %v2321_v56, %v2321_v56  ;;  %v3015_v56 = vld [vmem:[%s1047_s3] ss:$0 sm:$0xff] }
 0x6e8   : > { %3140 = vmatmul.mubr.msk.bf16.vlgmr.msra.gmra.mxu1 %vm1116_vm2, %v2322_v13 }
 0x6e9   : > { %3159 = vmatprep.mubr.msk.bf16.mxu1 %vm3699_vm1, %v3698_v19  ;;  %3152 = vmatpush3.bf16.msra.mxu1 %v3335_v38 }
 0x6ea   : > { %3153 = vmatprep.subr.bf16.mxu1 %v3698_v19 }
 0x6ed   : > { %3154 = vmatpush3.bf16.msra.mxu1 %v3336_v39 }
 0x6ee   : > { %3155 = vmatprep.subr.bf16.mxu1 %v3698_v19 }
 0x6f1   : > { %3156 = vmatpush3.bf16.msra.mxu1 %v3337_v40 }
 0x6f2   : > { %3157 = vmatprep.subr.bf16.mxu1 %v3698_v19 }
 0x6f5   : > { %3158 = vmatpush3.bf16.msra.mxu1 %v3338_v41 }
 0x7a8   : > { %v2383_v15 = vpop.f32.mrf.mxu1 }
 0x7a9   : > { %v2384_v16 = vadd.f32 %v2999_v14, %v2383_v15  ;;  %v3016_v14 = vld [vmem:[%s1050_s11] ss:$0 sm:$0xff] }
 0x7aa   : > { %v3141_v17 = vpop.f32.mrf.mxu1 }
 0x7ab   : > { %v2389_v18 = vadd.f32 %v2384_v16, %v4192_v23  ;;  %v3334_v23 = vld [vmem:[%s879_s26] sm:$0xff]   ;;  %s4626_s26 = sld [smem:[#allocation50_spill]] }
 0x7ac   : > { %v2386_v20 = vpop.f32.mrf.mxu1  ;;  %3146 = vmatpush3.bf16.msra.mxu0 %v3334_v23 }
 0x7ad   : > { %v2392_v6 = vsel %vm1116_vm2, %v2389_v18, 0.0 }
 0x7ae   : > { %2393 = vadd.xlane.f32.xlu0 %v2392_v6  ;;  %v3142_v21 = vpop.f32.mrf.mxu1 }
 0x7b1   : > { %s4627_s18 = scalar_lea.vmem %s4626_s26, %s4111_s0 }
 0x7b2   : > { %v3004_v34 = vld [vmem:[%s4627_s18] ss:$0 sm:$0xff] }
 0x837   : > { %v2394_v7 = vpop.xlane.xlu0 %2393 }
 0x838   : > { %v2396_v22 = vmul.f32 0.03125, %v2394_v7 }
 0x83a   : > { %v2397_v24 = vsub.f32 %v2389_v18, %v2396_v22 }
 0x83c   : > { %v2398_v25 = vmul.f32 %v2397_v24, %v2397_v24 }
 0x83e   : > { %v2399_v26 = vsel %vm1116_vm2, %v2398_v25, 0.0 }
 0x83f   : > { %2400 = vadd.xlane.f32.xlu1 %v2399_v26 }
 0x8c8   : > { %v2401_v28 = vpop.xlane.xlu1 %2400 }
 0x8c9   : > { %v2402_v29 = vmul.f32 0.03125, %v2401_v28 }
 0x8cb   : > { %v2403_v30 = vadd.f32 1e-12, %v2402_v29 }
 0x8cd   : > { %3355 = vrsqrt.f32 %v2403_v30 }
 0x8da   : > { %v3356_v31 = vpop.eup %3355 }
 0x8db   : > { %v2405_v33 = vmul.f32 %v3356_v31, %v2397_v24 }
 0x8dd   : > { %v2412_v35 = vmul.f32 %v3003_v32, %v2405_v33 }
 0x8df   : > { %v2419_v36 = vadd.f32 %v3004_v34, %v2412_v35 }
 0x8e1   : > { %v2420_v37 = vpack.c.bf16 %v2419_v36, %v2419_v36 }
 0x8e3   : > { %3148 = vmatmul.mubr.msk.bf16.vlgmr.msra.gmra.mxu0 %vm1116_vm2, %v2420_v37 }
 0x9a3   : > { %v2481_v43 = vpop.f32.mrf.mxu0 }
 0x9a4   : > { %v2482_v44 = vadd.f32 %v3005_v42, %v2481_v43 }
 0x9a5   : > { %v3149_v45 = vpop.f32.mrf.mxu0 }
 0x9a6   : > { %v2487_v46 = vmul.f32 %v2482_v44, %v2482_v44 }
 0x9a7   : > { %v2484_v47 = vpop.f32.mrf.mxu0 }
 0x9a8   : > { %v2488_v48 = vmul.f32 %v2487_v46, %v2482_v44 }
 0x9a9   : > { %v3150_v50 = vpop.f32.mrf.mxu0 }
 0x9aa   : > { %v2489_v51 = vmul.f32 0.044715, %v2488_v48 }
 0x9ac   : > { %v2490_v52 = vadd.f32 %v2489_v51, %v2482_v44 }
 0x9ae   : > { %v2491_v53 = vmul.f32 0.7978846, %v2490_v52 }
 0x9b0   : > { %3357 = vtanh.f32 %v2491_v53 }
 0x9bd   : > { %v3358_v19 = vpop.eup %3357 }
 0x9be   : > { %v2493_v54 = vadd.f32 1.0, %v3358_v19 }
 0x9c0   : > { %v2494_v55 = vmul.f32 0.5, %v2493_v54 }
 0x9c2   : > { %v2495_v57 = vmul.f32 %v2494_v55, %v2482_v44 }
 0x9c4   : > { %v2496_v58 = vpack.c.bf16 %v2495_v57, %v2495_v57 }
 0x9c6   : > { %3160 = vmatmul.mubr.msk.bf16.vlgmr.msra.gmra.mxu1 %vm2536_vm7, %v2496_v58 }
 0xa86   : > { %v2574_v62 = vpop.f32.mrf.mxu1 }
 0xa87   : > { %v2575_v63 = vadd.f32 %v3009_v59, %v2574_v62 }
 0xa88   : > { %v3161_v0 = vpop.f32.mrf.mxu1 }
 0xa89   : > { %v2580_v1 = vadd.f32 %v2575_v63, %v2419_v36 }
 0xa8a   : > { %v2577_v2 = vpop.f32.mrf.mxu1 }
 0xa8b   : > { %v2583_v3 = vsel %vm1116_vm2, %v2580_v1, 0.0 }
 0xa8c   : > { %2584 = vadd.xlane.f32.xlu0 %v2583_v3  ;;  %v3162_v4 = vpop.f32.mrf.mxu1 }
 0xb15   : > { %v2585_v60 = vpop.xlane.xlu0 %2584 }
 0xb16   : > { %v2586_v61 = vmul.f32 0.03125, %v2585_v60 }
 0xb18   : > { %v2587_v5 = vsub.f32 %v2580_v1, %v2586_v61 }
 0xb1a   : > { %v2588_v49 = vmul.f32 %v2587_v5, %v2587_v5 }
 0xb1c   : > { %v2589_v8 = vsel %vm1116_vm2, %v2588_v49, 0.0 }
 0xb1d   : > { %2590 = vadd.xlane.f32.xlu0 %v2589_v8 }
 0xba6   : > { %v2591_v9 = vpop.xlane.xlu0 %2590 }
 0xba7   : > { %v2592_v10 = vmul.f32 0.03125, %v2591_v9 }
 0xba9   : > { %v2593_v11 = vadd.f32 1e-12, %v2592_v10 }
 0xbab   : > { %3359 = vrsqrt.f32 %v2593_v11 }
 0xbb8   : > { %v3360_v12 = vpop.eup %3359 }
 0xbb9   : > { %v2595_v13 = vmul.f32 %v3360_v12, %v2587_v5 }
 0xbbb   : > { %v2602_v15 = vmul.f32 %v3015_v56, %v2595_v13  ;;  %2614 = sbr.rel (%p3017_p10) target bundleno = 3010 (0xbc2), region = 140 }
 0xbbd   : > { %v2609_v16 = vadd.f32 %v3016_v14, %v2602_v15 }
 0xbbf   : > { %2610 = vst.msk [vmem:[#allocation2] sm:$0xff] %vm1116_vm2, %v2609_v16 }
 0xbc0   : > { %vm2615_vm8 = vcmask 253952  }
 0xbc1   : > { %2616 = vst.msk [vmem:[%s1000_s7] sm:$0x1] %vm2615_vm8, %v2609_v16 }
 0xbc2 PF: > { %s4632_s5 = sld [smem:[#allocation27_spill]]  ;;  %s2630_s22 = sshll.u32 %s1000_s7, 4  ;;  %s2631_s22 = int_to_ptr.vmem [resolvable:$true] %s2630_s22 }
 0xbc3   : > { %s4634_s11 = sld [smem:[#allocation57_spill]]  ;;  %s2618_s14 = scalar_lea.sflag [#allocation5], %s4077_s28 }
 0xbc4   : > { %s3551_s29 = scalar_lea.vmem %s2631_s22, 16  ;;  %s3708_s23 = smov [#allocation15]  }
 0xbc5   : > { %p3552_p6 = scmp.ne.s32.totalorder %s2631_s22, %s3551_s29  ;;  %s3555_s10 = sshll.u32 %s3708_s23, 4  ;;  %s3556_s10 = int_to_ptr.vmem [resolvable:$false] %s3555_s10 }
 0xbc6   : > { %s3557_s21 = scalar_lea.vmem %s3556_s10, 32  ;;  %p3558_p12 = scmp.lt.s32.totalorder %s2631_s22, %s3556_s10 }
 0xbc7   : > { %p3553_p0 = pnand %p3552_p6, %p4011_p4  ;;  %p3559_p1 = scmp.lt.s32.totalorder %s3557_s21, %s3551_s29 }
 0xbc8   : > { %s3018_s9 = sshll.u32 %s4632_s5, 4 }
 0xbc9   : > { %s2628_s17 = scalar_lea.hbm %s4634_s11, %s3018_s9  ;;  %p3554_p11 = pneg %p3553_p0 }
 0xbca   : > { %p3560_p5 = por %p3559_p1, %p3558_p12 }
 0xbcc   : > { %p3561_p3 = pnand %p3560_p5, %p3554_p11 }
 0xbce   : > { %3564 = shalt.err (!%p3561_p3)
}
 0xbcf   : > { %s3565_s19 = scalar_lea.hbm %s2628_s17, 16  ;;  %s3569_s26 = scalar_lea.hbm %s4634_s11, 32 }
 0xbd0   : > { %p3566_p2 = scmp.ne.s32.totalorder %s2628_s17, %s3565_s19  ;;  %p3570_p8 = scmp.lt.s32.totalorder %s2628_s17, %s4634_s11 }
 0xbd1   : > { %p3571_p13 = scmp.lt.s32.totalorder %s3569_s26, %s3565_s19 }
 0xbd2   : > { %p3567_p9 = pnand %p3566_p2, %p4011_p4 }
 0xbd3   : > { %p3572_p10 = por %p3571_p13, %p3570_p8 }
 0xbd4   : > { %p3568_p7 = pneg %p3567_p9 }
 0xbd6   : > { %p3573_p6 = pnand %p3572_p10, %p3568_p7 }
 0xbd8   : > { %3576 = shalt.err (!%p3573_p6)
}
 0xbd9   : > { %3183 = dma.vmem_to_hbm [thread:$0]  (%p4011_p4), %s2631_s22, 16, %s2628_s17, %s2618_s14  }
 0xbda PF: > { %s4635_s16 = sld [smem:[#allocation30_spill]] }
 0xbdb   : > { %s4636_s4 = sld [smem:[#allocation24_spill]] }
 0xbdc   : > { %s4637_s1 = sld [smem:[#allocation35_spill]] }
 0xbe0   : > { %p3219_p0 = scmp.ge.s32.totalorder %s4635_s16, 2 }
 0xbe1   : > { %s2642_s15 = sand.u32 1, %s4636_s4  }
 0xbe2   : > { %p4638_p11 = scmp.ne.s32.totalorder %s4637_s1, 0  ;;  %s2643_s30 = scalar_lea.sflag [#allocation5], %s2642_s15 }
 0xbe4   : > { %p3209_p12 = pnand %p3219_p0, %p4638_p11 }
 0xbe6   : > { %p3210_p1 = pneg %p3209_p12 }
 0xbe8   : > { %3642 = dma.done.wait (%p3210_p1), %s2643_s30, 16  }
 0xbe9   : > { %3644 = vsyncadd (%p3210_p1), %s2643_s30, 4294967280  ;;  %s44_s5 = sadd.s32 1, %s4635_s16   ;;  %s4639_s2 = sld [smem:[#allocation22_spill]] }
 0xbea   : > { %p41_p5 = scmp.ge.s32.totalorder %s44_s5, 6   ;;  %s4640_s25 = sld [smem:[#allocation23_spill]] }
 0xbeb   : > { %s4641_s26 = sld [smem:[#allocation32_spill]] }
 0xbec   : > { %s4642_s27 = sld [smem:[#allocation25_spill]] }
 0xbed   : > { %s4643_s3 = sld [smem:[#allocation26_spill]] }
 0xbee   : > { %s4644_s28 = sld [smem:[#allocation36_spill]]  ;;  %43 = sbr.rel (!%p41_p5) target bundleno = 36 (0x24), region = 248 }
 0xbef   : > { %s4645_s29 = sld [smem:[#allocation28_spill]] }
 0xbf0   : > { %s4646_s0 = sld [smem:[#allocation29_spill]] }
 0xbf1   : > { %s4647_s4 = sld [smem:[#allocation31_spill]] }
 0xbf2   : > { %s4648_s30 = sld [smem:[#allocation33_spill]] }
 0xbf3   :  { %2647 = vsyncpa [#allocation4], 1 }
 0xbf4   :  { %2649 = vsyncpa [#allocation4 + $0x1], 1 }
 0xbf5   :  { %2650 = vsyncpa [#allocation7], 1 }
 0xbf6   :  { %2652 = vsyncpa [#allocation7 + $0x1], 1 }
 0xbf7   :  { %2653 = vsyncpa [#allocation10], 1 }
 0xbf8   :  { %2654 = vsyncpa [#allocation13], 1 }
 0xbf9   :  { %2656 = vsyncpa [#allocation13 + $0x1], 1 }
 0xbfa   :  { %2657 = vsyncpa [#allocation5], 1 }
 0xbfb   :  { %2659 = vsyncpa [#allocation5 + $0x1], 1 }

</bundles_post_ra>
